<compile_context>
chip_gen: v5e
topology: v5e:2x2
jax: 0.10.0
libtpu: 0.0.40
codegen_flags: <defaults>
</compile_context>

<pallas_src>
import jax
import jax.numpy as jnp
from jax import lax
from jax.experimental import pallas as pl
from jax.experimental.pallas import tpu as pltpu


def _linear_interp_matrix(out_size: int, in_size: int) -> jnp.ndarray:
    """Per-axis linear interpolation matrix A (out, in); PyTorch align_corners=False."""
    j = jnp.arange(out_size, dtype=jnp.float32)
    scale = in_size / out_size
    src = (j + 0.5) * scale - 0.5
    src = jnp.maximum(src, 0.0)                      # PyTorch clamps at 0 for linear
    i0 = jnp.minimum(jnp.floor(src).astype(jnp.int32), in_size - 1)
    i1 = jnp.minimum(i0 + 1, in_size - 1)
    lam = src - i0.astype(jnp.float32)
    a = (1.0 - lam)[:, None] * jax.nn.one_hot(i0, in_size, dtype=jnp.float32)
    a = a + lam[:, None] * jax.nn.one_hot(i1, in_size, dtype=jnp.float32)
    return a                                         # (out_size, in_size)


def preprocess_kernel(x_ref, aw_ref, adh_ref, w_ref, b_ref, o_ref):
    # x_ref  : (1, C, Din, Hin, Win) f32  — natural NCDHW block (one batch element)
    # aw_ref : (Wout, Win)           bf16 — W interpolation matrix (grid-invariant)
    # adh_ref: (TD*Hout, Din*Hin)    bf16 — kron(ad_tile, ah), Dout-tiled
    # w_ref  : (C,)  SMEM f32 — Conv3d(C,1,1) weights
    # b_ref  : (1,)  SMEM f32 — conv bias
    # o_ref  : (1, TD, Hout, Wout) f32
    _, C, Din, Hin, Win = x_ref.shape
    OHW, KDH = adh_ref.shape                    # TD*Hout, Din*Hin
    Wout = aw_ref.shape[0]
    TD, Hout = o_ref.shape[1], o_ref.shape[2]

    # ---- (1a) W-axis contraction for ALL channels in one lane-dense matmul ----
    # (C*Din*Hin, Win) x (Wout, Win)^T -> (C*Din*Hin, Wout), f32 accumulation.
    x_all = x_ref[...].reshape(C * Din * Hin, Win).astype(jnp.bfloat16)
    t_all = lax.dot_general(x_all, aw_ref[...], (((1,), (1,)), ((), ())),
                            preferred_element_type=jnp.float32)
    t_all = t_all.astype(jnp.bfloat16)          # operand of the fused D⊗H matmul

    adh = adh_ref[...]                          # (TD*Hout, Din*Hin) bf16
    w_c = [w_ref[c] for c in range(C)]          # hoisted SMEM scalar reads
    bias = b_ref[0]

    # ---- (1b)+(2)+(3): per-channel fused D⊗H matmul + normalize/conv accumulation ----
    sumsq = jnp.zeros((OHW, Wout), jnp.float32)
    wy = jnp.zeros((OHW, Wout), jnp.float32)
    for c in range(C):                          # C is small & static (unrolled)
        tc = t_all[c * KDH:(c + 1) * KDH, :]    # static sublane slice (Din*Hin, Wout)
        yc = lax.dot_general(adh, tc, (((1,), (0,)), ((), ())),
                             preferred_element_type=jnp.float32)   # (TD*Hout, Wout)
        sumsq = sumsq + yc * yc
        wy = wy + w_c[c] * yc

    # 1/max(||y||, 1e-12) == rsqrt(max(sum_sq, 1e-24)); rsqrt -> EUP slot, f32.
    inv = lax.rsqrt(jnp.maximum(sumsq, 1e-24))
    o_ref[...] = (wy * inv + bias).reshape(1, TD, Hout, Wout)


def preprocess(x, conv_w, conv_b, out_dhw):
    """x: (N, C, Din, Hin, Win) f32; conv_w: (C,); conv_b: (1,)
    -> (N, Dout, Hout, Wout) f32."""
    N, C, Din, Hin, Win = x.shape
    Dout, Hout, Wout = out_dhw

    # Per-axis interpolation operators (exact PyTorch trilinear semantics, f32),
    # then bf16 for the MXU; D and H fused into one kron operator.
    ad = _linear_interp_matrix(Dout, Din)                      # (Dout, Din)
    ah = _linear_interp_matrix(Hout, Hin)                      # (Hout, Hin)
    aw = _linear_interp_matrix(Wout, Win).astype(jnp.bfloat16)  # (Wout, Win)
    adh = jnp.kron(ad, ah).astype(jnp.bfloat16)                # (Dout*Hout, Din*Hin)

    # Per-generation VMEM budget (v5e/v6e: 128 MiB physical, v7x: 64 MiB).
    try:
        vmem_cap = int(pltpu.get_tpu_info().vmem_capacity_bytes)
    except Exception:
        vmem_cap = 64 * 1024 * 1024
    vmem_limit = int(min(vmem_cap // 2, 64 * 1024 * 1024))

    # Largest Dout tile (prefer no tiling) whose per-step working set fits.
    def step_bytes(td):
        return (2 * 4 * C * Din * Hin * Win            # x block (f32, dbl-buffered)
                + 2 * 2 * td * Hout * Din * Hin        # adh block (bf16, dbl-buffered)
                + 2 * 2 * Wout * Win                   # aw (bf16, dbl-buffered)
                + 2 * 4 * td * Hout * Wout             # out tile (f32, dbl-buffered)
                + 2 * C * Din * Hin * Wout             # t_all (bf16)
                + 3 * 4 * td * Hout * Wout)            # yc + sumsq + wy (f32)

    budget = int(0.6 * vmem_limit)
    cands = [Dout] + [t for t in range(Dout - 8, 0, -8)
                      if t % 8 == 0 and Dout % t == 0]
    TD = next((t for t in cands if step_bytes(t) <= budget), cands[-1])

    grid = (N, Dout // TD)
    steps_j = Dout // TD

    # Cost estimate matching the new schedule (W contraction repeated per j step).
    s_in = Din * Hin * Win
    s_out = Dout * Hout * Wout
    mm_flops = 2 * N * C * (steps_j * Din * Hin * Win * Wout   # W contraction
                            + Dout * Hout * Din * Hin * Wout)  # fused D⊗H
    epi_flops = N * s_out * (4 * C + 3)
    cost = pl.CostEstimate(
        flops=int(mm_flops + epi_flops),
        transcendentals=int(N * s_out),
        bytes_accessed=int(4 * N * C * s_in                    # x (DMA'd once per n)
                           + 4 * N * s_out                     # output
                           + 2 * N * steps_j * (Dout * Hout * Din * Hin // max(steps_j, 1)
                                                + Wout * Win)  # bf16 interp matrices
                           + 4 * (C + 1)),
    )

    out = pl.pallas_call(
        preprocess_kernel,
        out_shape=jax.ShapeDtypeStruct((N, Dout, Hout, Wout), jnp.float32),
        grid_spec=pltpu.PrefetchScalarGridSpec(
            num_scalar_prefetch=0,
            grid=grid,
            in_specs=[
                # x: natural NCDHW, constant along inner j axis -> DMA'd once per n.
                pl.BlockSpec((1, C, Din, Hin, Win), lambda n, j: (n, 0, 0, 0, 0)),
                pl.BlockSpec((Wout, Win), lambda n, j: (0, 0)),          # grid-invariant
                pl.BlockSpec((TD * Hout, Din * Hin), lambda n, j: (j, 0)),  # Dout-tiled kron
                pl.BlockSpec(memory_space=pltpu.MemorySpace.SMEM),       # conv_w
                pl.BlockSpec(memory_space=pltpu.MemorySpace.SMEM),       # conv_b
            ],
            out_specs=pl.BlockSpec((1, TD, Hout, Wout), lambda n, j: (n, j, 0, 0)),
        ),
        compiler_params=pltpu.CompilerParams(
            dimension_semantics=("parallel", "parallel"),
            vmem_limit_bytes=vmem_limit,
        ),
        cost_estimate=cost,
    )(x, aw, adh, conv_w, conv_b)
    return out


if __name__ == "__main__":
    key = jax.random.PRNGKey(0)
    kx, kw, kb = jax.random.split(key, 3)

    # Small stand-in shapes; the real module upsamples to (256, 128, 1600).
    N, C = 2, 4
    Din, Hin, Win = 8, 8, 64
    Dout, Hout, Wout = 16, 16, 128

    x = jax.random.normal(kx, (N, C, Din, Hin, Win), dtype=jnp.float32)
    # synthetic Conv3d(C, 1, kernel_size=1) parameters (see TODO above)
    conv_w = 0.1 * jax.random.normal(kw, (C,), dtype=jnp.float32)
    conv_b = 0.1 * jax.random.normal(kb, (1,), dtype=jnp.float32)

    out = jax.block_until_ready(preprocess(x, conv_w, conv_b, (Dout, Hout, Wout)))
    assert out.shape == (N, Dout, Hout, Wout), out.shape
    assert bool(jnp.all(jnp.isfinite(out)))

    # ---- matched-precision reference (same bf16 matmul operands / f32 accumulation):
    #      tight tolerance catches any index-ordering bug in the kron fusion. ----
    ad = _linear_interp_matrix(Dout, Din)
    ah = _linear_interp_matrix(Hout, Hin)
    aw_b = _linear_interp_matrix(Wout, Win).astype(jnp.bfloat16)
    adh_b = jnp.kron(ad, ah).astype(jnp.bfloat16)

    t = jnp.einsum('ncdhw,Ww->ncdhW', x.astype(jnp.bfloat16), aw_b,
                   preferred_element_type=jnp.float32)
    t = t.astype(jnp.bfloat16).reshape(N, C, Din * Hin, Wout)
    y = jnp.einsum('Ok,nckW->ncOW', adh_b, t, preferred_element_type=jnp.float32)
    y = y.reshape(N, C, Dout, Hout, Wout)
    yn = y / jnp.maximum(jnp.sqrt(jnp.sum(y * y, axis=1, keepdims=True)), 1e-12)
    ref_matched = jnp.einsum('c,ncDHW->nDHW', conv_w, yn) + conv_b[0]
    err_matched = float(jnp.max(jnp.abs(out - ref_matched)))
    assert err_matched < 5e-3, f"matched-precision max abs err {err_matched}"

    # ---- full-f32 reference (original PyTorch semantics; bf16-numerics sanity bound) ----
    aw_f = _linear_interp_matrix(Wout, Win)
    y32 = jnp.einsum('Dd,Hh,Ww,ncdhw->ncDHW', ad, ah, aw_f, x,
                     precision=lax.Precision.HIGHEST)
    y32 = y32 / jnp.maximum(jnp.sqrt(jnp.sum(y32 * y32, axis=1, keepdims=True)), 1e-12)
    ref32 = jnp.einsum('c,ncDHW->nDHW', conv_w, y32,
                       precision=lax.Precision.HIGHEST) + conv_b[0]
    err32 = float(jnp.max(jnp.abs(out - ref32)))
    assert err32 < 5e-2, f"f32 reference max abs err {err32}"

    print("KERNEL_OK")
</pallas_src>

<mosaic_0001>
module attributes {stable_mosaic.version = 11 : i64} {
  func.func @preprocess_kernel(%arg0: i32, %arg1: i32, %arg2: memref<1x4x8x8x64xf32, #tpu.memory_space<vmem>>, %arg3: memref<128x64xbf16, #tpu.memory_space<vmem>>, %arg4: memref<256x64xbf16, #tpu.memory_space<vmem>>, %arg5: memref<4xf32, #tpu.memory_space<smem>>, %arg6: memref<1xf32, #tpu.memory_space<smem>>, %arg7: memref<1x16x16x128xf32, #tpu.memory_space<vmem>>) attributes {dimension_semantics = [#tpu.dimension_semantics<parallel>, #tpu.dimension_semantics<parallel>], iteration_bounds = array<i64: 2, 1>, scalar_prefetch = 0 : i64, scratch_operands = 0 : i64, tpu.core_type = #tpu.core_type<tc>, window_params = [{transform_indices = @transform_0, window_bounds = array<i64: 1, 4, 8, 8, 64>}, {pipeline_mode = #tpu.pipeline_mode<synchronous>, transform_indices = @transform_1, window_bounds = array<i64: 128, 64>}, {transform_indices = @transform_2, window_bounds = array<i64: 256, 64>}, {transform_indices = @transform_3, window_bounds = array<i64: 4>}, {transform_indices = @transform_4, window_bounds = array<i64: 1>}, {transform_indices = @transform_5, window_bounds = array<i64: 1, 16, 16, 128>}]} {
    %c0 = arith.constant 0 : index
    %c0_0 = arith.constant 0 : index
    %c0_1 = arith.constant 0 : index
    %c0_2 = arith.constant 0 : index
    %c0_3 = arith.constant 0 : index
    %0 = vector.load %arg2[%c0, %c0_0, %c0_1, %c0_2, %c0_3] : memref<1x4x8x8x64xf32, #tpu.memory_space<vmem>>, vector<1x4x8x8x64xf32>
    %1 = vector.shape_cast %0 : vector<1x4x8x8x64xf32> to vector<256x64xf32>
    %2 = arith.truncf %1 : vector<256x64xf32> to vector<256x64xbf16>
    %c0_4 = arith.constant 0 : index
    %c0_5 = arith.constant 0 : index
    %3 = vector.load %arg3[%c0_4, %c0_5] : memref<128x64xbf16, #tpu.memory_space<vmem>>, vector<128x64xbf16>
    %cst = arith.constant dense<0.000000e+00> : vector<256x128xf32>
    %4 = tpu.matmul %2, %3, %cst {dimension_numbers = #tpu.dot_dimension_numbers<[1], [1], [0], [0], [0, 0, 1, 0], [], []>} : vector<256x64xbf16>, vector<128x64xbf16>, vector<256x128xf32> -> vector<256x128xf32>
    %5 = arith.truncf %4 : vector<256x128xf32> to vector<256x128xbf16>
    %c0_6 = arith.constant 0 : index
    %c0_7 = arith.constant 0 : index
    %6 = vector.load %arg4[%c0_6, %c0_7] : memref<256x64xbf16, #tpu.memory_space<vmem>>, vector<256x64xbf16>
    %c0_8 = arith.constant 0 : index
    %7 = memref.load %arg5[%c0_8] : memref<4xf32, #tpu.memory_space<smem>>
    %c1 = arith.constant 1 : index
    %8 = memref.load %arg5[%c1] : memref<4xf32, #tpu.memory_space<smem>>
    %c2 = arith.constant 2 : index
    %9 = memref.load %arg5[%c2] : memref<4xf32, #tpu.memory_space<smem>>
    %c3 = arith.constant 3 : index
    %10 = memref.load %arg5[%c3] : memref<4xf32, #tpu.memory_space<smem>>
    %c0_9 = arith.constant 0 : index
    %11 = memref.load %arg6[%c0_9] : memref<1xf32, #tpu.memory_space<smem>>
    %cst_10 = arith.constant 0.000000e+00 : f32
    %12 = vector.broadcast %cst_10 : f32 to vector<256x128xf32>
    %cst_11 = arith.constant 0.000000e+00 : f32
    %13 = vector.broadcast %cst_11 : f32 to vector<256x128xf32>
    %14 = vector.extract_strided_slice %5 {offsets = [0, 0], sizes = [64, 128], strides = [1, 1]} : vector<256x128xbf16> to vector<64x128xbf16>
    %cst_12 = arith.constant dense<0.000000e+00> : vector<256x128xf32>
    %15 = tpu.matmul %6, %14, %cst_12 {dimension_numbers = #tpu.dot_dimension_numbers<[1], [0], [0], [1], [0, 0, 1, 1], [], []>} : vector<256x64xbf16>, vector<64x128xbf16>, vector<256x128xf32> -> vector<256x128xf32>
    %16 = arith.mulf %15, %15 : vector<256x128xf32>
    %17 = arith.addf %12, %16 : vector<256x128xf32>
    %18 = vector.broadcast %7 : f32 to vector<256x128xf32>
    %19 = arith.mulf %18, %15 : vector<256x128xf32>
    %20 = arith.addf %13, %19 : vector<256x128xf32>
    %21 = vector.extract_strided_slice %5 {offsets = [64, 0], sizes = [64, 128], strides = [1, 1]} : vector<256x128xbf16> to vector<64x128xbf16>
    %cst_13 = arith.constant dense<0.000000e+00> : vector<256x128xf32>
    %22 = tpu.matmul %6, %21, %cst_13 {dimension_numbers = #tpu.dot_dimension_numbers<[1], [0], [0], [1], [0, 0, 1, 1], [], []>} : vector<256x64xbf16>, vector<64x128xbf16>, vector<256x128xf32> -> vector<256x128xf32>
    %23 = arith.mulf %22, %22 : vector<256x128xf32>
    %24 = arith.addf %17, %23 : vector<256x128xf32>
    %25 = vector.broadcast %8 : f32 to vector<256x128xf32>
    %26 = arith.mulf %25, %22 : vector<256x128xf32>
    %27 = arith.addf %20, %26 : vector<256x128xf32>
    %28 = vector.extract_strided_slice %5 {offsets = [128, 0], sizes = [64, 128], strides = [1, 1]} : vector<256x128xbf16> to vector<64x128xbf16>
    %cst_14 = arith.constant dense<0.000000e+00> : vector<256x128xf32>
    %29 = tpu.matmul %6, %28, %cst_14 {dimension_numbers = #tpu.dot_dimension_numbers<[1], [0], [0], [1], [0, 0, 1, 1], [], []>} : vector<256x64xbf16>, vector<64x128xbf16>, vector<256x128xf32> -> vector<256x128xf32>
    %30 = arith.mulf %29, %29 : vector<256x128xf32>
    %31 = arith.addf %24, %30 : vector<256x128xf32>
    %32 = vector.broadcast %9 : f32 to vector<256x128xf32>
    %33 = arith.mulf %32, %29 : vector<256x128xf32>
    %34 = arith.addf %27, %33 : vector<256x128xf32>
    %35 = vector.extract_strided_slice %5 {offsets = [192, 0], sizes = [64, 128], strides = [1, 1]} : vector<256x128xbf16> to vector<64x128xbf16>
    %cst_15 = arith.constant dense<0.000000e+00> : vector<256x128xf32>
    %36 = tpu.matmul %6, %35, %cst_15 {dimension_numbers = #tpu.dot_dimension_numbers<[1], [0], [0], [1], [0, 0, 1, 1], [], []>} : vector<256x64xbf16>, vector<64x128xbf16>, vector<256x128xf32> -> vector<256x128xf32>
    %37 = arith.mulf %36, %36 : vector<256x128xf32>
    %38 = arith.addf %31, %37 : vector<256x128xf32>
    %39 = vector.broadcast %10 : f32 to vector<256x128xf32>
    %40 = arith.mulf %39, %36 : vector<256x128xf32>
    %41 = arith.addf %34, %40 : vector<256x128xf32>
    %cst_16 = arith.constant 1.000000e-24 : f32
    %42 = vector.broadcast %cst_16 : f32 to vector<256x128xf32>
    %43 = arith.maximumf %38, %42 : vector<256x128xf32>
    %44 = math.rsqrt %43 : vector<256x128xf32>
    %45 = arith.mulf %41, %44 : vector<256x128xf32>
    %46 = vector.broadcast %11 : f32 to vector<256x128xf32>
    %47 = arith.addf %45, %46 : vector<256x128xf32>
    %48 = vector.shape_cast %47 : vector<256x128xf32> to vector<1x16x16x128xf32>
    %c0_17 = arith.constant 0 : index
    %c0_18 = arith.constant 0 : index
    %c0_19 = arith.constant 0 : index
    %c0_20 = arith.constant 0 : index
    %49 = vector.load %arg7[%c0_17, %c0_18, %c0_19, %c0_20] : memref<1x16x16x128xf32, #tpu.memory_space<vmem>>, vector<1x16x16x128xf32>
    tpu.vector_store %arg7[%c0_17, %c0_18, %c0_19, %c0_20], %48 {strides = array<i32>} : memref<1x16x16x128xf32, #tpu.memory_space<vmem>>, vector<1x16x16x128xf32>,
    return
  }
  func.func @transform_0(%arg0: i32, %arg1: i32) -> (i32, i32, i32, i32, i32) {
    %c0_i32 = arith.constant 0 : i32
    %c0_i32_0 = arith.constant 0 : i32
    %c0_i32_1 = arith.constant 0 : i32
    %c0_i32_2 = arith.constant 0 : i32
    %c0_i32_3 = arith.constant 0 : i32
    return %arg0, %c0_i32, %c0_i32_0, %c0_i32_1, %c0_i32_2 : i32, i32, i32, i32, i32
  }
  func.func @transform_1(%arg0: i32, %arg1: i32) -> (i32, i32) {
    %c0_i32 = arith.constant 0 : i32
    %c0_i32_0 = arith.constant 0 : i32
    %c0_i32_1 = arith.constant 0 : i32
    return %c0_i32, %c0_i32_0 : i32, i32
  }
  func.func @transform_2(%arg0: i32, %arg1: i32) -> (i32, i32) {
    %c0_i32 = arith.constant 0 : i32
    %c0_i32_0 = arith.constant 0 : i32
    return %arg1, %c0_i32 : i32, i32
  }
  func.func @transform_3(%arg0: i32, %arg1: i32) -> i32 {
    %c0_i32 = arith.constant 0 : i32
    %c0_i32_0 = arith.constant 0 : i32
    return %c0_i32 : i32
  }
  func.func @transform_4(%arg0: i32, %arg1: i32) -> i32 {
    %c0_i32 = arith.constant 0 : i32
    %c0_i32_0 = arith.constant 0 : i32
    return %c0_i32 : i32
  }
  func.func @transform_5(%arg0: i32, %arg1: i32) -> (i32, i32, i32, i32) {
    %c0_i32 = arith.constant 0 : i32
    %c0_i32_0 = arith.constant 0 : i32
    %c0_i32_1 = arith.constant 0 : i32
    return %arg0, %arg1, %c0_i32, %c0_i32_0 : i32, i32, i32, i32
  }
}

</mosaic_0001>

<bundles_post_ra>
// kernel: tpu_custom_call.1
= control target key start
LH: loop header
LB: loop body
LE: loop exit
PB: predicated region body
PF: predicated region fallthrough
CT: control target
= control target key end

     0   :  { %s4284_s0 = inlined_call_operand.hbm [shape: f32[2,4,8,8,64], index: 0, kind: input, shape index: {}]   ;;  %s4285_s1 = inlined_call_operand.vmem [shape: bf16[128,64], index: 1, kind: input, shape index: {}]   ;;  %s4286_s2 = inlined_call_operand.vmem [shape: bf16[256,64], index: 2, kind: input, shape index: {}]   ;;  %s4287_s3 = inlined_call_operand.vmem [shape: f32[4], index: 3, kind: input, shape index: {}]   ;;  %s4288_s4 = inlined_call_operand.<no memory space> [shape: f32[1], index: 4, kind: input, shape index: {}]   ;;  %s4289_s5 = inlined_call_operand.hbm [shape: f32[2,16,16,128], index: 5, kind: output, shape index: {}]  }
   0x1   :  { %4312 = sst [smem:[#allocation33_spill]] %s4287_s3 }
   0x2   :  { %10 = sst [smem:[#allocation2]] %s4288_s4 }
   0x3   :  { %11 = vsyncpa [#allocation4], 0 }
   0x4   :  { %13 = vsyncpa [#allocation4 + $0x1], 0 }
   0x5   :  { %14 = vsyncpa [#allocation6], 0 }
   0x6   :  { %15 = vsyncpa [#allocation5], 0 }
   0x7   :  { %17 = vsyncpa [#allocation5 + $0x1], 0  ;;  %s2857_s20 = smov 0   ;;  %s2859_s21 = smov 0  }
   0x8   :  { %s2861_s22 = smov 0   ;;  %s2863_s23 = smov 0  }
   0x9   :  { %s2865_s24 = smov 0   ;;  %s2867_s25 = smov 0  }
   0xa LB: > { %4313 = sst [smem:[#allocation12_spill]] %s2817_s25  ;;  %s2308_s4 = sadd.s32 4294967295, %s2817_s25   ;;  %s2817_s25 = sphi %s2867_s25, %s23_s25   ;;  %s2813_s24 = sphi %s2865_s24, %s4367_s24   ;;  %s2809_s23 = sphi %s2863_s23, %s4366_s23   ;;  %s2805_s22 = sphi %s2861_s22, %s4365_s22   ;;  %s2801_s21 = sphi %s2859_s21, %s4364_s21   ;;  %s2797_s20 = sphi %s2857_s20, %s4363_s20  }
   0xb   : > { %s2309_s26 = sadd.s32 4294967294, %s2817_s25   ;;  %s42_s27 = sadd.s32 1, %s2805_s22 }
   0xc   : > { %p49_p0 = scmp.ne.s32.totalorder %s2805_s22, %s2801_s21  ;;  %p50_p1 = scmp.eq.s32.totalorder %s2817_s25, 0 }
   0xd   : > { %p55_p2 = scmp.ne.s32.totalorder %s2801_s21, %s2797_s20  ;;  %p2895_p3 = scmp.eq.s32.totalorder %s2308_s4, 0 }
   0xe   : > { %p170_p4 = scmp.eq.s32.totalorder %s2308_s4, 1  ;;  %p2899_p5 = por %p50_p1, %p49_p0 }
   0xf   : > { %p176_p6 = scmp.eq.s32.totalorder %s2309_s26, 1  ;;  %p2905_p7 = por %p2895_p3, %p55_p2 }
  0x10   : > { %p2909_p8 = por %p170_p4, %p49_p0  ;;  %p2310_p10 = scmp.ge.s32.totalorder %s2817_s25, 1 }
  0x11   : > { %p2913_p9 = por %p176_p6, %p55_p2  ;;  %p183_p11 = scmp.lt.s32.totalorder %s2817_s25, 3 }
  0x12   : > { %s4319_s3 = sld [smem:[#allocation33_spill]]  ;;  %p2313_p13 = scmp.ge.s32.totalorder %s2817_s25, 2 }
  0x13   : > { %p2922_p12 = pnand %p2310_p10, %p183_p11  ;;  %p2564_p0 = scmp.lt.s32.totalorder %s2817_s25, 2 }
  0x14   : > { %s35_s13 = sadd.s32 1, %s2813_s24  ;;  %s221_s14 = sand.u32 1, %s2805_s22  }
  0x15   : > { %p2551_p1 = pneg %p2922_p12  ;;  %p2932_p2 = pnand %p2564_p0, %p2899_p5 }
  0x16   : > { %p37_p6 = scmp.ge.s32.totalorder %s35_s13, 2  ;;  %s2819_s15 = smov [#allocation7]  }
  0x17   : > { %p2552_p4 = pnand %p2551_p1, %p2895_p3  ;;  %s2314_s16 = sshll.u32 %s221_s14, 8 }
  0x18   : > { %s207_s10 = sshll.u32 %s4319_s3, 4  ;;  %s4369_s13 = smov (%p37_p6, %s35_s13), 0  ;;  %s208_s10 = int_to_ptr.vmem [resolvable:$true] %s207_s10 }
  0x19   : > { %2554 = dma.vmem_to_smem (!%p2552_p4), %s208_s10, 16, %s2819_s15, [#allocation6]  }
  0x1a   : > { %s39_s17 = ssub.s32 %s2813_s24, %s4369_s13  ;;  %s2505_s18 = sshll.u32 %s2813_s24, 8 }
  0x1b   : > { %p40_p10 = scmp.eq.s32.totalorder %s39_s17, 0  ;;  %s230_s26 = scalar_lea.hbm %s4284_s0, %s2505_s18 }
  0x1c   : > { %s225_s29 = scalar_lea.vmem [#allocation3], %s2314_s16  ;;  %s231_s3 = sshll.u32 %s230_s26, 4  ;;  %s232_s3 = int_to_ptr.hbm [resolvable:$true] %s231_s3 }
  0x1d   : > { %s233_s8 = sshll.u32 %s225_s29, 4  ;;  %s222_s10 = scalar_lea.sflag [#allocation4], %s221_s14  ;;  %s234_s8 = int_to_ptr.vmem [resolvable:$true] %s233_s8 }
  0x1e   : > { %s2951_s9 = scalar_select %p40_p10, %s2805_s22, %s42_s27  }
  0x1f   : > { %s2820_s15 = smov 128   ;;  %s2821_s25 = smov 8  }
  0x20   : > { %2558 = dma.hbm_to_vmem [thread:$0]  (!%p2932_p2), %s232_s3, 4096, %s234_s8, %s222_s10, %s2820_s15, %s2820_s15, %s2821_s25  }
  0x21   : > { %245 = sbr.rel (%p2922_p12) target bundleno = 912 (0x390), region = 40 }
  0x26   : > { %s2958_s17 = sand.u32 1, %s2801_s21  }
  0x27   : > { %s2318_s27 = sshll.u32 %s2958_s17, 8  ;;  %s248_s16 = scalar_lea.sflag [#allocation4], %s2958_s17 }
  0x28   : > { %s2964_s18 = scalar_lea.vmem [#allocation3], %s2318_s27 }
  0x29   : > { %2784 = dma.done.wait (%p2905_p7), %s248_s16, 4096  }
  0x2a   : > { %2786 = vsyncadd (%p2905_p7), %s248_s16, 4294963200 }
  0x2b   : > { %2788 = dma.done.wait (%p2895_p3), [#allocation6], 16  }
  0x2c   : > { %2790 = vsyncadd (%p2895_p3), [#allocation6], 4294967280 }
  0x2d   : > { %262 = sfence }
  0x2e   : > { %v2513_v0 = vld [vmem:[%s4285_s1 + $0x38] sm:$0xff]  ;;  %vm402_vm0 = vcmask 523264   ;;  %v2512_v2 = vld [vmem:[%s4285_s1 + $0x30] sm:$0xff]  ;;  %v2511_v4 = vld [vmem:[%s4285_s1 + $0x28] sm:$0xff]  ;;  %s628_s25 = sld [smem:[#allocation7]]  ;;  %s3444_s28 = scalar_lea.vmem [#allocation8], %s2318_s27 }
  0x2f   : > { %v473_v1 = vsel %vm402_vm0, %v2513_v0, 0  ;;  %v470_v3 = vsel %vm402_vm0, %v2512_v2, 0  ;;  %v467_v5 = vsel %vm402_vm0, %v2511_v4, 0  ;;  %v2510_v6 = vld [vmem:[%s4285_s1 + $0x20] sm:$0xff]  ;;  %v2509_v8 = vld [vmem:[%s4285_s1 + $0x18] sm:$0xff]  ;;  %v2508_v10 = vld [vmem:[%s4285_s1 + $0x10] sm:$0xff] }
  0x30   : > { %475 = vmatpush.bf16.xpose.msra.mxu0 %v473_v1  ;;  %v464_v7 = vsel %vm402_vm0, %v2510_v6, 0  ;;  %v461_v9 = vsel %vm402_vm0, %v2509_v8, 0  ;;  %v458_v11 = vsel %vm402_vm0, %v2508_v10, 0  ;;  %v2507_v12 = vld [vmem:[%s4285_s1 + $0x8] sm:$0xff]  ;;  %v2506_v14 = vld [vmem:[%s4285_s1] sm:$0xff]  ;;  %v300_v19 = vld [vmem:[%s2964_s18 + $0x10] sm:$0xff] }
  0x31   : > { %v455_v13 = vsel %vm402_vm0, %v2507_v12, 0  ;;  %v452_v15 = vsel %vm402_vm0, %v2506_v14, 0  ;;  %v298_v16 = vld [vmem:[%s2964_s18] sm:$0xff]  ;;  %v299_v17 = vld [vmem:[%s2964_s18 + $0x8] sm:$0xff]  ;;  %v301_v20 = vld [vmem:[%s2964_s18 + $0x18] sm:$0xff]  ;;  %s2369_s11 = sld [smem:[#allocation7 + $0x1]] }
  0x32   : > { %v330_v18 = vpack.c.bf16 %v299_v17, %v298_v16  ;;  %v331_v21 = vpack.c.bf16 %v301_v20, %v300_v19  ;;  %v302_v22 = vld [vmem:[%s2964_s18 + $0x20] sm:$0xff]  ;;  %v303_v23 = vld [vmem:[%s2964_s18 + $0x28] sm:$0xff]  ;;  %v304_v25 = vld [vmem:[%s2964_s18 + $0x30] sm:$0xff]  ;;  %s2370_s12 = sld [smem:[#allocation7 + $0x2]]  ;;  %s2530_s29 = sshll.u32 %s2809_s23, 8 }
  0x33   : > { %v332_v24 = vpack.c.bf16 %v303_v23, %v302_v22  ;;  %v305_v26 = vld [vmem:[%s2964_s18 + $0x38] sm:$0xff]  ;;  %v306_v28 = vld [vmem:[%s2964_s18 + $0x40] sm:$0xff]  ;;  %v307_v29 = vld [vmem:[%s2964_s18 + $0x48] sm:$0xff]  ;;  %s2371_s30 = sld [smem:[#allocation7 + $0x3]]  ;;  %s2193_s10 = scalar_lea.hbm %s4289_s5, %s2530_s29 }
  0x34   : > { %v333_v27 = vpack.c.bf16 %v305_v26, %v304_v25  ;;  %v334_v30 = vpack.c.bf16 %v307_v29, %v306_v28  ;;  %v308_v31 = vld [vmem:[%s2964_s18 + $0x50] sm:$0xff]  ;;  %v309_v32 = vld [vmem:[%s2964_s18 + $0x58] sm:$0xff]  ;;  %v310_v34 = vld [vmem:[%s2964_s18 + $0x60] sm:$0xff]  ;;  %s632_s14 = sld [smem:[#allocation2]]  ;;  %s2194_s23 = sshll.u32 %s3444_s28, 4  ;;  %s2195_s23 = int_to_ptr.vmem [resolvable:$true] %s2194_s23 }
  0x35   : > { %v335_v33 = vpack.c.bf16 %v309_v32, %v308_v31  ;;  %v311_v35 = vld [vmem:[%s2964_s18 + $0x68] sm:$0xff]  ;;  %v312_v37 = vld [vmem:[%s2964_s18 + $0x70] sm:$0xff]  ;;  %v313_v38 = vld [vmem:[%s2964_s18 + $0x78] sm:$0xff]  ;;  %s2196_s15 = sshll.u32 %s2193_s10, 4  ;;  %s2179_s16 = scalar_lea.sflag [#allocation5], %s2958_s17  ;;  %s2197_s15 = int_to_ptr.hbm [resolvable:$true] %s2196_s15 }
  0x36   : > { %v336_v36 = vpack.c.bf16 %v311_v35, %v310_v34  ;;  %v337_v39 = vpack.c.bf16 %v313_v38, %v312_v37  ;;  %v314_v40 = vld [vmem:[%s2964_s18 + $0x80] sm:$0xff]  ;;  %v315_v41 = vld [vmem:[%s2964_s18 + $0x88] sm:$0xff]  ;;  %v316_v45 = vld [vmem:[%s2964_s18 + $0x90] sm:$0xff]  ;;  %s2745_s3 = sshra.s32 %s2197_s15, 4  ;;  %s2746_s3 = int_to_ptr.hbm [resolvable:$true] %s2745_s3 }
  0x37   : > { %v338_v42 = vpack.c.bf16 %v315_v41, %v314_v40  ;;  %v317_v46 = vld [vmem:[%s2964_s18 + $0x98] sm:$0xff]  ;;  %v318_v50 = vld [vmem:[%s2964_s18 + $0xa0] sm:$0xff]  ;;  %v319_v51 = vld [vmem:[%s2964_s18 + $0xa8] sm:$0xff]  ;;  %p2752_p11 = scmp.lt.s32.totalorder %s2746_s3, %s4289_s5 }
  0x38   : > { %476 = vmatpush.bf16.xpose.msra.mxu0 %v470_v3  ;;  %v339_v47 = vpack.c.bf16 %v317_v46, %v316_v45  ;;  %v340_v52 = vpack.c.bf16 %v319_v51, %v318_v50  ;;  %v320_v55 = vld [vmem:[%s2964_s18 + $0xb0] sm:$0xff]  ;;  %v321_v56 = vld [vmem:[%s2964_s18 + $0xb8] sm:$0xff]  ;;  %v322_v2 = vld [vmem:[%s2964_s18 + $0xc0] sm:$0xff] }
  0x39   : > { %v341_v57 = vpack.c.bf16 %v321_v56, %v320_v55  ;;  %v323_v3 = vld [vmem:[%s2964_s18 + $0xc8] sm:$0xff]  ;;  %v324_v22 = vld [vmem:[%s2964_s18 + $0xd0] sm:$0xff]  ;;  %v325_v23 = vld [vmem:[%s2964_s18 + $0xd8] sm:$0xff] }
  0x3a   : > { %v326_v28 = vld [vmem:[%s2964_s18 + $0xe0] sm:$0xff]  ;;  %v327_v29 = vld [vmem:[%s2964_s18 + $0xe8] sm:$0xff]  ;;  %v328_v35 = vld [vmem:[%s2964_s18 + $0xf0] sm:$0xff] }
  0x3b   : > { %v344_v31 = vpack.c.bf16 %v327_v29, %v326_v28  ;;  %v3077_v34 = vld [vmem:[%s4286_s2 + $0x40] sm:$0xff]  ;;  %v3094_v46 = vld [vmem:[%s4286_s2 + $0x48] sm:$0xff] }
  0x3c   : > { %v3084_v37 = vld [vmem:[%s4286_s2 + $0x60] sm:$0xff] }
  0x3d   : > { %v3108_v55 = vld [vmem:[%s4286_s2] sm:$0xff] }
  0x40   : > { %477 = vmatpush.bf16.xpose.msra.mxu0 %v467_v5 }
  0x48   : > { %478 = vmatpush.bf16.xpose.msra.mxu0 %v464_v7 }
  0x50   : > { %479 = vmatpush.bf16.xpose.msra.mxu0 %v461_v9  ;;  %v342_v9 = vpack.c.bf16 %v323_v3, %v322_v2  ;;  %v3117_v2 = vld [vmem:[%s4286_s2 + $0x50] sm:$0xff]  ;;  %v3122_v3 = vld [vmem:[%s4286_s2 + $0x8] sm:$0xff] }
  0x58   : > { %480 = vmatpush.bf16.xpose.msra.mxu0 %v458_v11 }
  0x60   : > { %481 = vmatpush.bf16.xpose.msra.mxu0 %v455_v13 }
  0x68   : > { %482 = vmatpush.bf16.xpose.msra.mxu0 %v452_v15 }
  0x6f   : > { %2353 = vmatmul.msk.bf16.vlgmr.msra.gmra.mxu0 %vm402_vm0, %v330_v18 }
  0x7f   : > { %2354 = vmatmul.msk.bf16.gmra.mxu0 %vm402_vm0, %v331_v21  ;;  %v3050_v21 = vld [vmem:[%s4286_s2 + $0x30] sm:$0xff] }
  0x8f   : > { %2355 = vmatmul.msk.bf16.gmra.mxu0 %vm402_vm0, %v332_v24  ;;  %v343_v24 = vpack.c.bf16 %v325_v23, %v324_v22 }
  0x9f   : > { %2356 = vmatmul.msk.bf16.gmra.mxu0 %vm402_vm0, %v333_v27  ;;  %v3060_v27 = vld [vmem:[%s4286_s2 + $0x38] sm:$0xff] }
  0xaf   : > { %2357 = vmatmul.msk.bf16.gmra.mxu0 %vm402_vm0, %v334_v30  ;;  %v3067_v30 = vld [vmem:[%s4286_s2 + $0x58] sm:$0xff] }
  0xbf   : > { %2358 = vmatmul.msk.bf16.gmra.mxu0 %vm402_vm0, %v335_v33 }
  0xcf   : > { %2359 = vmatmul.msk.bf16.gmra.mxu0 %vm402_vm0, %v336_v36  ;;  %v329_v36 = vld [vmem:[%s2964_s18 + $0xf8] sm:$0xff] }
  0xd0   : > { %v345_v38 = vpack.c.bf16 %v329_v36, %v328_v35 }
  0xdf   : > { %2360 = vmatmul.msk.bf16.gmra.mxu0 %vm402_vm0, %v337_v39 }
  0xec   : > { %v484_v43 = vpop.f32.mrf.mxu0 }
  0xed   : > { %v564_v14 = vpack.c.bf16 %v484_v43, %v484_v43 }
  0xef   : > { %2361 = vmatmul.msk.bf16.gmra.mxu0 %vm402_vm0, %v338_v42  ;;  %v721_v18 = vunpack.c.l.b16 %v564_v14 }
  0xf4   : > { %v486_v44 = vpop.f32.mrf.mxu0 }
  0xf5   : > { %v565_v11 = vpack.c.bf16 %v486_v44, %v486_v44 }
  0xf7   : > { %v722_v16 = vunpack.c.l.b16 %v565_v11  ;;  %v3154_v11 = vld [vmem:[%s4286_s2 + $0x18] sm:$0xff] }
  0xf9   : > { %v729_v20 = vpack.c.b16 %v722_v16, %v721_v18 }
  0xfc   : > { %v489_v48 = vpop.f32.mrf.mxu0 }
  0xfd   : > { %v566_v7 = vpack.c.bf16 %v489_v48, %v489_v48  ;;  %v3099_v48 = vld [vmem:[%s4286_s2 + $0x68] sm:$0xff] }
  0xff   : > { %2362 = vmatmul.msk.bf16.gmra.mxu0 %vm402_vm0, %v339_v47  ;;  %v723_v15 = vunpack.c.l.b16 %v566_v7  ;;  %v3138_v7 = vld [vmem:[%s4286_s2 + $0x10] sm:$0xff] }
 0x104   : > { %v491_v49 = vpop.f32.mrf.mxu0 }
 0x105   : > { %v567_v4 = vpack.c.bf16 %v491_v49, %v491_v49 }
 0x107   : > { %v724_v12 = vunpack.c.l.b16 %v567_v4  ;;  %v3127_v4 = vld [vmem:[%s4286_s2 + $0x70] sm:$0xff] }
 0x109   : > { %v730_v17 = vpack.c.b16 %v724_v12, %v723_v15 }
 0x10c   : > { %v494_v53 = vpop.f32.mrf.mxu0 }
 0x10d   : > { %v568_v63 = vpack.c.bf16 %v494_v53, %v494_v53 }
 0x10f   : > { %2363 = vmatmul.msk.bf16.gmra.mxu0 %vm402_vm0, %v340_v52  ;;  %v725_v8 = vunpack.c.l.b16 %v568_v63 }
 0x114   : > { %v496_v54 = vpop.f32.mrf.mxu0 }
 0x115   : > { %v569_v61 = vpack.c.bf16 %v496_v54, %v496_v54 }
 0x117   : > { %v726_v5 = vunpack.c.l.b16 %v569_v61 }
 0x119   : > { %v731_v13 = vpack.c.b16 %v726_v5, %v725_v8  ;;  %v3143_v8 = vld [vmem:[%s4286_s2 + $0x78] sm:$0xff] }
 0x11c   : > { %v499_v58 = vpop.f32.mrf.mxu0 }
 0x11d   : > { %v570_v59 = vpack.c.bf16 %v499_v58, %v499_v58 }
 0x11f   : > { %2364 = vmatmul.msk.bf16.gmra.mxu0 %vm402_vm0, %v341_v57  ;;  %v727_v0 = vunpack.c.l.b16 %v570_v59 }
 0x124   : > { %v501_v60 = vpop.f32.mrf.mxu0 }
 0x125   : > { %v571_v62 = vpack.c.bf16 %v501_v60, %v501_v60 }
 0x127   : > { %v728_v1 = vunpack.c.l.b16 %v571_v62 }
 0x129   : > { %v732_v6 = vpack.c.b16 %v728_v1, %v727_v0 }
 0x12b   : > { %789 = vmatpush.bf16.msrb.mxu0 %v732_v6  ;;  %2531 = vmatpush.bf16.msra.mxu1 %v732_v6 }
 0x12c   : > { %2532 = vmatpush.bf16.msra.mxu2 %v732_v6  ;;  %2533 = vmatpush.bf16.msra.mxu3 %v732_v6  ;;  %v3044_v10 = vpop.f32.mrf.mxu0 }
 0x12d   : > { %v572_v59 = vpack.c.bf16 %v3044_v10, %v3044_v10 }
 0x12f   : > { %2365 = vmatmul.msk.bf16.gmra.mxu0 %vm402_vm0, %v342_v9  ;;  %2534 = vmatpush.bf16.msra.mxu1 %v731_v13  ;;  %v1011_v63 = vunpack.c.l.b16 %v572_v59 }
 0x130   : > { %790 = vmatpush.bf16.msrb.mxu0 %v731_v13  ;;  %2535 = vmatpush.bf16.msra.mxu2 %v731_v13 }
 0x131   : > { %2536 = vmatpush.bf16.msra.mxu3 %v731_v13 }
 0x133   : > { %2537 = vmatpush.bf16.msra.mxu1 %v730_v17 }
 0x134   : > { %791 = vmatpush.bf16.msrb.mxu0 %v730_v17  ;;  %2538 = vmatpush.bf16.msra.mxu2 %v730_v17  ;;  %v506_v19 = vpop.f32.mrf.mxu0 }
 0x135   : > { %2539 = vmatpush.bf16.msra.mxu3 %v730_v17  ;;  %v573_v56 = vpack.c.bf16 %v506_v19, %v506_v19 }
 0x137   : > { %2540 = vmatpush.bf16.msra.mxu1 %v729_v20  ;;  %v1012_v61 = vunpack.c.l.b16 %v573_v56 }
 0x138   : > { %792 = vmatpush.bf16.msrb.mxu0 %v729_v20  ;;  %2541 = vmatpush.bf16.msra.mxu2 %v729_v20 }
 0x139   : > { %2542 = vmatpush.bf16.msra.mxu3 %v729_v20  ;;  %v1019_v1 = vpack.c.b16 %v1012_v61, %v1011_v63  ;;  %v3163_v20 = vld [vmem:[%s4286_s2 + $0x20] sm:$0xff] }
 0x13a   : > { %2437 = vmatmul.msk.bf16.vlgmr.msra.gmra.mxu1 %vm402_vm0, %v3122_v3 }
 0x13b   : > { %2442 = vmatmul.msk.bf16.vlgmr.msra.gmra.mxu2 %vm402_vm0, %v3050_v21 }
 0x13c   : > { %v509_v25 = vpop.f32.mrf.mxu0  ;;  %2447 = vmatmul.msk.bf16.vlgmr.msra.gmra.mxu3 %vm402_vm0, %v3067_v30 }
 0x13d   : > { %v574_v52 = vpack.c.bf16 %v509_v25, %v509_v25 }
 0x13f   : > { %2366 = vmatmul.msk.bf16.gmra.mxu0 %vm402_vm0, %v343_v24  ;;  %v1013_v60 = vunpack.c.l.b16 %v574_v52 }
 0x144   : > { %v511_v26 = vpop.f32.mrf.mxu0 }
 0x145   : > { %v575_v50 = vpack.c.bf16 %v511_v26, %v511_v26 }
 0x147   : > { %v1014_v57 = vunpack.c.l.b16 %v575_v50 }
 0x149   : > { %v1020_v62 = vpack.c.b16 %v1014_v57, %v1013_v60 }
 0x14a   : > { %2438 = vmatmul.msk.bf16.gmra.mxu1 %vm402_vm0, %v3138_v7 }
 0x14b   : > { %2443 = vmatmul.msk.bf16.gmra.mxu2 %vm402_vm0, %v3060_v27 }
 0x14c   : > { %v514_v32 = vpop.f32.mrf.mxu0  ;;  %2448 = vmatmul.msk.bf16.gmra.mxu3 %vm402_vm0, %v3084_v37 }
 0x14d   : > { %v576_v47 = vpack.c.bf16 %v514_v32, %v514_v32 }
 0x14f   : > { %2367 = vmatmul.msk.bf16.gmra.mxu0 %vm402_vm0, %v344_v31  ;;  %v1015_v53 = vunpack.c.l.b16 %v576_v47 }
 0x154   : > { %v516_v33 = vpop.f32.mrf.mxu0 }
 0x155   : > { %v577_v43 = vpack.c.bf16 %v516_v33, %v516_v33 }
 0x157   : > { %v1016_v51 = vunpack.c.l.b16 %v577_v43 }
 0x159   : > { %v1021_v58 = vpack.c.b16 %v1016_v51, %v1015_v53 }
 0x15a   : > { %2439 = vmatmul.msk.bf16.gmra.mxu1 %vm402_vm0, %v3154_v11 }
 0x15b   : > { %2444 = vmatmul.msk.bf16.gmra.mxu2 %vm402_vm0, %v3077_v34 }
 0x15c   : > { %v519_v39 = vpop.f32.mrf.mxu0  ;;  %2449 = vmatmul.msk.bf16.gmra.mxu3 %vm402_vm0, %v3099_v48 }
 0x15d   : > { %v578_v40 = vpack.c.bf16 %v519_v39, %v519_v39 }
 0x15f   : > { %2368 = vmatmul.msk.bf16.gmra.mxu0 %vm402_vm0, %v345_v38  ;;  %v1017_v44 = vunpack.c.l.b16 %v578_v40 }
 0x164   : > { %v521_v41 = vpop.f32.mrf.mxu0 }
 0x165   : > { %v579_v42 = vpack.c.bf16 %v521_v41, %v521_v41 }
 0x167   : > { %v1018_v45 = vunpack.c.l.b16 %v579_v42  ;;  %v3172_v42 = vld [vmem:[%s4286_s2 + $0x28] sm:$0xff] }
 0x169   : > { %v1022_v49 = vpack.c.b16 %v1018_v45, %v1017_v44 }
 0x16a   : > { %2440 = vmatmul.msk.bf16.gmra.mxu1 %vm402_vm0, %v3163_v20 }
 0x16b   : > { %2445 = vmatmul.msk.bf16.gmra.mxu2 %vm402_vm0, %v3094_v46 }
 0x16c   : > { %1031 = vmatpush.bf16.msrb.mxu2 %v1022_v49  ;;  %v524_v54 = vpop.f32.mrf.mxu0  ;;  %2450 = vmatmul.msk.bf16.gmra.mxu3 %vm402_vm0, %v3127_v4 }
 0x16d   : > { %v580_v33 = vpack.c.bf16 %v524_v54, %v524_v54 }
 0x16f   : > { %2436 = vmatmul.msk.bf16.vlgmr.msrb.gmra.mxu0 %vm402_vm0, %v3108_v55  ;;  %v1253_v39 = vunpack.c.l.b16 %v580_v33 }
 0x170   : > { %1032 = vmatpush.bf16.msrb.mxu2 %v1021_v58 }
 0x174   : > { %1033 = vmatpush.bf16.msrb.mxu2 %v1020_v62  ;;  %v526_v0 = vpop.f32.mrf.mxu0 }
 0x175   : > { %v581_v29 = vpack.c.bf16 %v526_v0, %v526_v0 }
 0x177   : > { %v1254_v36 = vunpack.c.l.b16 %v581_v29 }
 0x178   : > { %1034 = vmatpush.bf16.msrb.mxu2 %v1019_v1 }
 0x179   : > { %v1261_v41 = vpack.c.b16 %v1254_v36, %v1253_v39  ;;  %v3252_v39 = vstv %s2369_s11 }
 0x17a   : > { %2441 = vmatmul.msk.bf16.gmra.mxu1 %vm402_vm0, %v3172_v42 }
 0x17b   : > { %2446 = vmatmul.msk.bf16.gmra.mxu2 %vm402_vm0, %v3117_v2 }
 0x17c   : > { %v529_v5 = vpop.f32.mrf.mxu0  ;;  %2451 = vmatmul.msk.bf16.gmra.mxu3 %vm402_vm0, %v3143_v8 }
 0x17d   : > { %v582_v25 = vpack.c.bf16 %v529_v5, %v529_v5 }
 0x17f   : > { %v1255_v35 = vunpack.c.l.b16 %v582_v25 }
 0x184   : > { %v531_v6 = vpop.f32.mrf.mxu0 }
 0x185   : > { %v583_v22 = vpack.c.bf16 %v531_v6, %v531_v6 }
 0x187   : > { %v1256_v31 = vunpack.c.l.b16 %v583_v22 }
 0x189   : > { %v1262_v38 = vpack.c.b16 %v1256_v31, %v1255_v35 }
 0x18b   : > { %2452 = vmatmul.msk.bf16.vlgmr.msrb.gmra.mxu2 %vm402_vm0, %v3108_v55 }
 0x18c   : > { %v534_v9 = vpop.f32.mrf.mxu0 }
 0x18d   : > { %v584_v17 = vpack.c.bf16 %v534_v9, %v534_v9 }
 0x18f   : > { %v1257_v26 = vunpack.c.l.b16 %v584_v17 }
 0x194   : > { %v536_v10 = vpop.f32.mrf.mxu0 }
 0x195   : > { %v585_v15 = vpack.c.bf16 %v536_v10, %v536_v10 }
 0x197   : > { %v1258_v23 = vunpack.c.l.b16 %v585_v15 }
 0x199   : > { %v1263_v32 = vpack.c.b16 %v1258_v23, %v1257_v26 }
 0x19b   : > { %2453 = vmatmul.msk.bf16.gmra.mxu2 %vm402_vm0, %v3122_v3 }
 0x19c   : > { %v539_v12 = vpop.f32.mrf.mxu0 }
 0x19d   : > { %v586_v13 = vpack.c.bf16 %v539_v12, %v539_v12 }
 0x19f   : > { %v1259_v18 = vunpack.c.l.b16 %v586_v13 }
 0x1a4   : > { %v541_v14 = vpop.f32.mrf.mxu0 }
 0x1a5   : > { %v587_v16 = vpack.c.bf16 %v541_v14, %v541_v14 }
 0x1a7   : > { %v1260_v19 = vunpack.c.l.b16 %v587_v16 }
 0x1a9   : > { %v1264_v24 = vpack.c.b16 %v1260_v19, %v1259_v18 }
 0x1ab   : > { %2454 = vmatmul.msk.bf16.gmra.mxu2 %vm402_vm0, %v3138_v7  ;;  %1273 = vmatpush.bf16.msrb.mxu3 %v1264_v24 }
 0x1ac   : > { %v544_v28 = vpop.f32.mrf.mxu0 }
 0x1ad   : > { %v588_v18 = vpack.c.bf16 %v544_v28, %v544_v28 }
 0x1af   : > { %1274 = vmatpush.bf16.msrb.mxu3 %v1263_v32  ;;  %v1495_v24 = vunpack.c.l.b16 %v588_v18 }
 0x1b3   : > { %1275 = vmatpush.bf16.msrb.mxu3 %v1262_v38 }
 0x1b4   : > { %v546_v40 = vpop.f32.mrf.mxu0 }
 0x1b5   : > { %v589_v13 = vpack.c.bf16 %v546_v40, %v546_v40 }
 0x1b7   : > { %1276 = vmatpush.bf16.msrb.mxu3 %v1261_v41  ;;  %v1496_v22 = vunpack.c.l.b16 %v589_v13  ;;  %v3238_v35 = vpop.f32.mrf.mxu1 }
 0x1b9   : > { %v1503_v25 = vpack.c.b16 %v1496_v22, %v1495_v24 }
 0x1ba   : > { %2468 = vmatmul.msk.bf16.vlgmr.msrb.gmra.mxu3 %vm402_vm0, %v3108_v55 }
 0x1bb   : > { %2455 = vmatmul.msk.bf16.gmra.mxu2 %vm402_vm0, %v3154_v11 }
 0x1bc   : > { %v549_v43 = vpop.f32.mrf.mxu0 }
 0x1bd   : > { %v590_v10 = vpack.c.bf16 %v549_v43, %v549_v43 }
 0x1be   : > { %v3180_v44 = vpop.f32.mrf.mxu2 }
 0x1bf   : > { %4322 = vst [vmem:[#allocation13_spill] sm:$0xff] %v3180_v44  ;;  %v3192_v53 = vpop.f32.mrf.mxu3  ;;  %v1497_v19 = vunpack.c.l.b16 %v590_v10  ;;  %v3258_v43 = vpop.f32.mrf.mxu1 }
 0x1c0   : > { %4326 = vst [vmem:[#allocation17_spill] sm:$0xff] %v3192_v53 }
 0x1c4   : > { %v551_v45 = vpop.f32.mrf.mxu0 }
 0x1c5   : > { %v591_v5 = vpack.c.bf16 %v551_v45, %v551_v45 }
 0x1c6   : > { %v3182_v47 = vpop.f32.mrf.mxu2 }
 0x1c7   : > { %4323 = vst [vmem:[#allocation14_spill] sm:$0xff] %v3182_v47  ;;  %v3200_v58 = vpop.f32.mrf.mxu3  ;;  %v1498_v14 = vunpack.c.l.b16 %v591_v5 }
 0x1c8   : > { %4328 = vst [vmem:[#allocation19_spill] sm:$0xff] %v3200_v58 }
 0x1c9   : > { %v1504_v23 = vpack.c.b16 %v1498_v14, %v1497_v19 }
 0x1ca   : > { %2469 = vmatmul.msk.bf16.gmra.mxu3 %vm402_vm0, %v3122_v3 }
 0x1cb   : > { %2456 = vmatmul.msk.bf16.gmra.mxu2 %vm402_vm0, %v3163_v20 }
 0x1cc   : > { %v554_v49 = vpop.f32.mrf.mxu0 }
 0x1cd   : > { %v592_v63 = vpack.c.bf16 %v554_v49, %v554_v49 }
 0x1ce   : > { %v3188_v50 = vpop.f32.mrf.mxu2 }
 0x1cf   : > { %4324 = vst [vmem:[#allocation15_spill] sm:$0xff] %v3188_v50  ;;  %v1499_v12 = vunpack.c.l.b16 %v592_v63  ;;  %v3208_v16 = vpop.f32.mrf.mxu3 }
 0x1d0   : > { %4330 = vst [vmem:[#allocation21_spill] sm:$0xff] %v3208_v16 }
 0x1d4   : > { %v556_v51 = vpop.f32.mrf.mxu0 }
 0x1d5   : > { %v593_v60 = vpack.c.bf16 %v556_v51, %v556_v51 }
 0x1d6   : > { %v3190_v52 = vpop.f32.mrf.mxu2 }
 0x1d7   : > { %4325 = vst [vmem:[#allocation16_spill] sm:$0xff] %v3190_v52  ;;  %v1500_v6 = vunpack.c.l.b16 %v593_v60  ;;  %v3214_v29 = vpop.f32.mrf.mxu3 }
 0x1d8   : > { %4333 = vst [vmem:[#allocation24_spill] sm:$0xff] %v3214_v29 }
 0x1d9   : > { %v1505_v15 = vpack.c.b16 %v1500_v6, %v1499_v12 }
 0x1da   : > { %2470 = vmatmul.msk.bf16.gmra.mxu3 %vm402_vm0, %v3138_v7 }
 0x1db   : > { %2457 = vmatmul.msk.bf16.gmra.mxu2 %vm402_vm0, %v3172_v42 }
 0x1dc   : > { %v559_v54 = vpop.f32.mrf.mxu0 }
 0x1dd   : > { %v594_v57 = vpack.c.bf16 %v559_v54, %v559_v54  ;;  %v3268_v54 = vpop.f32.mrf.mxu1 }
 0x1de   : > { %v3198_v56 = vpop.f32.mrf.mxu2 }
 0x1df   : > { %4327 = vst [vmem:[#allocation18_spill] sm:$0xff] %v3198_v56  ;;  %v1501_v0 = vunpack.c.l.b16 %v594_v57  ;;  %v3224_v31 = vpop.f32.mrf.mxu3 }
 0x1e0   : > { %4335 = vst [vmem:[#allocation26_spill] sm:$0xff] %v3224_v31 }
 0x1e4   : > { %v561_v59 = vpop.f32.mrf.mxu0 }
 0x1e5   : > { %v595_v61 = vpack.c.bf16 %v561_v59, %v561_v59 }
 0x1e6   : > { %v3202_v62 = vpop.f32.mrf.mxu2 }
 0x1e7   : > { %4329 = vst [vmem:[#allocation20_spill] sm:$0xff] %v3202_v62  ;;  %v1502_v1 = vunpack.c.l.b16 %v595_v61  ;;  %v3234_v33 = vpop.f32.mrf.mxu3 }
 0x1e8   : > { %4337 = vst [vmem:[#allocation28_spill] sm:$0xff] %v3234_v33 }
 0x1e9   : > { %v1506_v9 = vpack.c.b16 %v1502_v1, %v1501_v0  ;;  %v3286_v0 = vpop.f32.mrf.mxu1 }
 0x1ea   : > { %2471 = vmatmul.msk.bf16.gmra.mxu3 %vm402_vm0, %v3154_v11 }
 0x1eb   : > { %2458 = vmatmul.msk.bf16.gmra.mxu2 %vm402_vm0, %v3050_v21  ;;  %1515 = vmatpush.bf16.msrb.mxu1 %v1506_v9 }
 0x1ee   : > { %v3210_v17 = vpop.f32.mrf.mxu2 }
 0x1ef   : > { %4331 = vst [vmem:[#allocation22_spill] sm:$0xff] %v3210_v17  ;;  %1516 = vmatpush.bf16.msrb.mxu1 %v1505_v15  ;;  %v3240_v36 = vpop.f32.mrf.mxu3  ;;  %v3394_v17 = vstv %s2371_s30  ;;  %s2751_s30 = scalar_lea.hbm %s4289_s5, 512 }
 0x1f0   : > { %4338 = vst [vmem:[#allocation29_spill] sm:$0xff] %v3240_v36 }
 0x1f3   : > { %1517 = vmatpush.bf16.msrb.mxu1 %v1504_v23 }
 0x1f6   : > { %v3212_v26 = vpop.f32.mrf.mxu2 }
 0x1f7   : > { %4332 = vst [vmem:[#allocation23_spill] sm:$0xff] %v3212_v26  ;;  %1518 = vmatpush.bf16.msrb.mxu1 %v1503_v25  ;;  %v3262_v49 = vpop.f32.mrf.mxu3 }
 0x1f8   : > { %4339 = vst [vmem:[#allocation30_spill] sm:$0xff] %v3262_v49 }
 0x1fa   : > { %2472 = vmatmul.msk.bf16.gmra.mxu3 %vm402_vm0, %v3163_v20  ;;  %2484 = vmatmul.msk.bf16.vlgmr.msrb.gmra.mxu1 %vm402_vm0, %v3108_v55 }
 0x1fb   : > { %2459 = vmatmul.msk.bf16.gmra.mxu2 %vm402_vm0, %v3060_v27 }
 0x1fe   : > { %v3222_v28 = vpop.f32.mrf.mxu2 }
 0x1ff   : > { %4334 = vst [vmem:[#allocation25_spill] sm:$0xff] %v3222_v28  ;;  %v3270_v57 = vpop.f32.mrf.mxu3 }
 0x200   : > { %4340 = vst [vmem:[#allocation31_spill] sm:$0xff] %v3270_v57 }
 0x206   : > { %v3226_v32 = vpop.f32.mrf.mxu2 }
 0x207   : > { %4336 = vst [vmem:[#allocation27_spill] sm:$0xff] %v3226_v32  ;;  %v3288_v1 = vpop.f32.mrf.mxu3 }
 0x208   : > { %4341 = vst [vmem:[#allocation32_spill] sm:$0xff] %v3288_v1 }
 0x20a   : > { %2473 = vmatmul.msk.bf16.gmra.mxu3 %vm402_vm0, %v3172_v42  ;;  %2485 = vmatmul.msk.bf16.gmra.mxu1 %vm402_vm0, %v3122_v3  ;;  %v3250_v3 = vstv %s628_s25  ;;  %s2747_s25 = scalar_lea.hbm %s2746_s3, 256 }
 0x20b   : > { %2460 = vmatmul.msk.bf16.gmra.mxu2 %vm402_vm0, %v3077_v34  ;;  %v941_v40 = vmul.f32 %v3250_v3, %v3238_v35  ;;  %v943_v59 = vmul.f32 %v3250_v3, %v3268_v54  ;;  %p2748_p3 = scmp.ne.s32.totalorder %s2746_s3, %s2747_s25  ;;  %p2753_p12 = scmp.lt.s32.totalorder %s2751_s30, %s2747_s25 }
 0x20d   : > { %p2749_p5 = pnand %p2748_p3, %p2909_p8  ;;  %p2754_p0 = por %p2753_p12, %p2752_p11 }
 0x20e   : > { %v3236_v55 = vpop.f32.mrf.mxu2 }
 0x20f   : > { %v1116_v25 = vmul.f32 %v3236_v55, %v3236_v55  ;;  %p2750_p7 = pneg %p2749_p5 }
 0x211   : > { %p2755_p1 = pnand %p2754_p0, %p2750_p7 }
 0x216   : > { %v3242_v38 = vpop.f32.mrf.mxu2 }
 0x217   : > { %v1117_v49 = vmul.f32 %v3242_v38, %v3242_v38 }
 0x21a   : > { %2474 = vmatmul.msk.bf16.gmra.mxu3 %vm402_vm0, %v3050_v21  ;;  %2486 = vmatmul.msk.bf16.gmra.mxu1 %vm402_vm0, %v3138_v7 }
 0x21b   : > { %2461 = vmatmul.msk.bf16.gmra.mxu2 %vm402_vm0, %v3094_v46 }
 0x21e   : > { %v3256_v41 = vpop.f32.mrf.mxu2 }
 0x21f   : > { %v1183_v45 = vmul.f32 %v3252_v39, %v3256_v41 }
 0x221   : > { %v3264_v7 = vadd.f32 %v1183_v45, %v941_v40 }
 0x226   : > { %v3266_v51 = vpop.f32.mrf.mxu2 }
 0x22a   : > { %2475 = vmatmul.msk.bf16.gmra.mxu3 %vm402_vm0, %v3060_v27  ;;  %2487 = vmatmul.msk.bf16.gmra.mxu1 %vm402_vm0, %v3154_v11  ;;  %v3298_v11 = vpop.f32.mrf.mxu1 }
 0x22b   : > { %2462 = vmatmul.msk.bf16.gmra.mxu2 %vm402_vm0, %v3117_v2  ;;  %v945_v9 = vmul.f32 %v3250_v3, %v3298_v11 }
 0x22e   : > { %v3280_v60 = vpop.f32.mrf.mxu2 }
 0x22f   : > { %v1185_v61 = vmul.f32 %v3252_v39, %v3280_v60  ;;  %v1120_v44 = vmul.f32 %v3280_v60, %v3280_v60 }
 0x231   : > { %v3284_v63 = vadd.f32 %v1185_v61, %v943_v59 }
 0x236   : > { %v3290_v5 = vpop.f32.mrf.mxu2 }
 0x23a   : > { %2476 = vmatmul.msk.bf16.gmra.mxu3 %vm402_vm0, %v3077_v34  ;;  %2488 = vmatmul.msk.bf16.gmra.mxu1 %vm402_vm0, %v3163_v20  ;;  %v3312_v20 = vpop.f32.mrf.mxu1 }
 0x23b   : > { %2463 = vmatmul.msk.bf16.gmra.mxu2 %vm402_vm0, %v3067_v30 }
 0x23d   : > { %v3300_v6 = vpop.f32.mrf.mxu3 }
 0x23e   : > { %v3304_v10 = vpop.f32.mrf.mxu2  ;;  %v1358_v61 = vmul.f32 %v3300_v6, %v3300_v6 }
 0x23f   : > { %v1187_v12 = vmul.f32 %v3252_v39, %v3304_v10 }
 0x241   : > { %v3308_v13 = vadd.f32 %v1187_v12, %v945_v9 }
 0x242   : > { %v3322_v18 = vpop.f32.mrf.mxu1 }
 0x245   : > { %v3310_v14 = vpop.f32.mrf.mxu3 }
 0x246   : > { %v3354_v57 = vpop.f32.mrf.mxu2 }
 0x24a   : > { %2477 = vmatmul.msk.bf16.gmra.mxu3 %vm402_vm0, %v3094_v46  ;;  %2489 = vmatmul.msk.bf16.gmra.mxu1 %vm402_vm0, %v3172_v42  ;;  %v3332_v22 = vpop.f32.mrf.mxu1 }
 0x24b   : > { %2464 = vmatmul.msk.bf16.gmra.mxu2 %vm402_vm0, %v3084_v37 }
 0x24d   : > { %v3320_v15 = vpop.f32.mrf.mxu3 }
 0x24e   : > { %v3372_v53 = vpop.f32.mrf.mxu2 }
 0x252   : > { %v3338_v24 = vpop.f32.mrf.mxu1 }
 0x255   : > { %v3324_v19 = vpop.f32.mrf.mxu3 }
 0x25a   : > { %2478 = vmatmul.msk.bf16.gmra.mxu3 %vm402_vm0, %v3117_v2  ;;  %2490 = vmatmul.msk.bf16.gmra.mxu1 %vm402_vm0, %v3050_v21  ;;  %v794_v21 = vpop.f32.mrf.mxu0  ;;  %v3350_v59 = vpop.f32.mrf.mxu1 }
 0x25b   : > { %2465 = vmatmul.msk.bf16.gmra.mxu2 %vm402_vm0, %v3099_v48  ;;  %v874_v40 = vmul.f32 %v794_v21, %v794_v21 }
 0x25d   : > { %v3334_v42 = vpop.f32.mrf.mxu3  ;;  %v1148_v9 = vadd.f32 %v1116_v25, %v874_v40  ;;  %v1359_v25 = vmul.f32 %v3310_v14, %v3310_v14 }
 0x25f   : > { %v1390_v1 = vadd.f32 %v1358_v61, %v1148_v9 }
 0x262   : > { %v796_v12 = vpop.f32.mrf.mxu0 }
 0x263   : > { %v875_v33 = vmul.f32 %v796_v12, %v796_v12 }
 0x265   : > { %v3336_v23 = vpop.f32.mrf.mxu3  ;;  %v1149_v61 = vadd.f32 %v1117_v49, %v875_v33  ;;  %v939_v49 = vmul.f32 %v3250_v3, %v794_v21 }
 0x267   : > { %v1391_v58 = vadd.f32 %v1359_v25, %v1149_v61  ;;  %v1360_v25 = vmul.f32 %v3320_v15, %v3320_v15 }
 0x26a   : > { %2479 = vmatmul.msk.bf16.gmra.mxu3 %vm402_vm0, %v3067_v30  ;;  %2491 = vmatmul.msk.bf16.gmra.mxu1 %vm402_vm0, %v3060_v27 }
 0x26b   : > { %2466 = vmatmul.msk.bf16.gmra.mxu2 %vm402_vm0, %v3127_v4 }
 0x26d   : > { %v3348_v45 = vpop.f32.mrf.mxu3 }
 0x275   : > { %v3358_v31 = vpop.f32.mrf.mxu3 }
 0x277   : > { %v1520_v27 = vpop.f32.mrf.mxu1 }
 0x278   : > { %v1600_v36 = vmul.f32 %v1520_v27, %v1520_v27 }
 0x27a   : > { %2480 = vmatmul.msk.bf16.gmra.mxu3 %vm402_vm0, %v3084_v37  ;;  %2492 = vmatmul.msk.bf16.gmra.mxu1 %vm402_vm0, %v3077_v34  ;;  %v1632_v29 = vadd.f32 %v1600_v36, %v1390_v1  ;;  %v1118_v34 = vmul.f32 %v3256_v41, %v3256_v41  ;;  %v876_v36 = vmul.f32 %v3238_v35, %v3238_v35  ;;  %v3387_v41 = vstv %s2370_s12 }
 0x27b   : > { %2467 = vmatmul.msk.bf16.gmra.mxu2 %vm402_vm0, %v3143_v8 }
 0x27c   : > { %v1729_v40 = vmax.f32 %v1632_v29, 1e-24  ;;  %v1181_v29 = vmul.f32 %v3252_v39, %v3236_v55  ;;  %v1150_v26 = vadd.f32 %v1118_v34, %v876_v36  ;;  %v1119_v34 = vmul.f32 %v3266_v51, %v3266_v51 }
 0x27d   : > { %v3380_v33 = vpop.f32.mrf.mxu3  ;;  %v877_v36 = vmul.f32 %v3258_v43, %v3258_v43 }
 0x27e   : > { %2620 = vrsqrt.f32 %v1729_v40  ;;  %v1213_v55 = vadd.f32 %v1181_v29, %v939_v49  ;;  %v1392_v21 = vadd.f32 %v1360_v25, %v1150_v26  ;;  %v3406_v26 = vpop.f32.mrf.mxu2  ;;  %v1182_v25 = vmul.f32 %v3252_v39, %v3242_v38 }
 0x27f   : > { %v3368_v9 = vpop.f32.mrf.mxu1  ;;  %vm1767_vm2 = vweird.f32 %v1729_v40 }
 0x280   : > { %v1601_v16 = vmul.f32 %v3368_v9, %v3368_v9 }
 0x282   : > { %v1633_v1 = vadd.f32 %v1601_v16, %v1391_v58  ;;  %v1423_v58 = vmul.f32 %v3387_v41, %v3300_v6 }
 0x284   : > { %v2621_v32 = vpop.eup %2620  ;;  %v3385_v61 = vmax.f32 %v1633_v1, 1e-24  ;;  %v1455_v6 = vadd.f32 %v1423_v58, %v1213_v55  ;;  %v1151_v58 = vadd.f32 %v1119_v34, %v877_v36 }
 0x285   : > { %v1762_v28 = vmul.f32 %v2621_v32, %v1729_v40  ;;  %vm1768_vm1 = vweird.f32 %v2621_v32 }
 0x286   : > { %2622 = vrsqrt.f32 %v3385_v61  ;;  %vm1769_vm3 = vmor %vm1767_vm2, %vm1768_vm1  ;;  %vm1777_vm5 = vweird.f32 %v3385_v61 }
 0x287   : > { %v3392_v16 = vpop.f32.mrf.mxu1  ;;  %v1763_v35 = vmul.f32 %v2621_v32, %v1762_v28  ;;  %v1665_v28 = vmul.f32 %v3394_v17, %v1520_v27 }
 0x288   : > { %v1602_v1 = vmul.f32 %v3392_v16, %v3392_v16 }
 0x289   : > { %v1764_v62 = vmul.f32 0.5, %v1763_v35  ;;  %v1361_v35 = vmul.f32 %v3324_v19, %v3324_v19  ;;  %v1697_v38 = vadd.f32 %v1665_v28, %v1455_v6  ;;  %v1666_v28 = vmul.f32 %v3394_v17, %v3368_v9 }
 0x28a   : > { %v1634_v56 = vadd.f32 %v1602_v1, %v1392_v21  ;;  %2481 = vmatmul.msk.bf16.gmra.mxu3 %vm402_vm0, %v3099_v48  ;;  %2493 = vmatmul.msk.bf16.gmra.mxu1 %vm402_vm0, %v3094_v46  ;;  %v3415_v1 = vpop.f32.mrf.mxu3  ;;  %v940_v46 = vmul.f32 %v3250_v3, %v796_v12  ;;  %v1424_v12 = vmul.f32 %v3387_v41, %v3310_v14 }
 0x28b   : > { %v1765_v29 = vsub.f32 1.5, %v1764_v62  ;;  %v1393_v47 = vadd.f32 %v1361_v35, %v1151_v58  ;;  %v1362_v14 = vmul.f32 %v3334_v42, %v3334_v42 }
 0x28c   : > { %v2623_v49 = vpop.eup %2622  ;;  %v3413_v21 = vmax.f32 %v1634_v56, 1e-24  ;;  %v3422_v56 = vstv %s632_s14  ;;  %v1214_v34 = vadd.f32 %v1182_v25, %v940_v46 }
 0x28d   : > { %v1766_v52 = vmul.f32 %v2621_v32, %v1765_v29  ;;  %v1772_v27 = vmul.f32 %v2623_v49, %v3385_v61  ;;  %vm1778_vm4 = vweird.f32 %v2623_v49 }
 0x28e   : > { %2624 = vrsqrt.f32 %v3413_v21  ;;  %vm1779_vm6 = vmor %vm1777_vm5, %vm1778_vm4  ;;  %vm1787_vm8 = vweird.f32 %v3413_v21 }
 0x28f   : > { %v3420_v62 = vpop.f32.mrf.mxu1  ;;  %v1770_v55 = vsel %vm1769_vm3, %v2621_v32, %v1766_v52  ;;  %v1773_v50 = vmul.f32 %v2623_v49, %v1772_v27  ;;  %v878_v52 = vmul.f32 %v3268_v54, %v3268_v54 }
 0x290   : > { %v1603_v29 = vmul.f32 %v3420_v62, %v3420_v62  ;;  %v2081_v40 = vmul.f32 %v1770_v55, %v1697_v38 }
 0x291   : > { %v1774_v36 = vmul.f32 0.5, %v1773_v50  ;;  %v3439_v50 = vpop.f32.mrf.mxu2  ;;  %v1152_v9 = vadd.f32 %v1120_v44, %v878_v52  ;;  %v879_v44 = vmul.f32 %v3286_v0, %v3286_v0  ;;  %v1121_v52 = vmul.f32 %v3290_v5, %v3290_v5 }
 0x292   : > { %v1635_v32 = vadd.f32 %v1603_v29, %v1393_v47  ;;  %v2114_v6 = vadd.f32 %v3422_v56, %v2081_v40  ;;  %v1456_v47 = vadd.f32 %v1424_v12, %v1214_v34  ;;  %v3449_v58 = vpop.f32.mrf.mxu3  ;;  %v1425_v40 = vmul.f32 %v3387_v41, %v3320_v15 }
 0x293   : > { %v1775_v35 = vsub.f32 1.5, %v1774_v36  ;;  %v1394_v36 = vadd.f32 %v1362_v14, %v1152_v9 }
 0x294   : > { %v2625_v27 = vpop.eup %2624  ;;  %v3437_v25 = vmax.f32 %v1635_v32, 1e-24  ;;  %2146 = vst [vmem:[%s3444_s28] sm:$0xff] %v2114_v6  ;;  %v1698_v55 = vadd.f32 %v1666_v28, %v1456_v47  ;;  %v1667_v32 = vmul.f32 %v3394_v17, %v3392_v16  ;;  %v1457_v14 = vadd.f32 %v1425_v40, %v3264_v7 }
 0x295   : > { %v1782_v60 = vmul.f32 %v2625_v27, %v3413_v21  ;;  %v1776_v54 = vmul.f32 %v2623_v49, %v1775_v35  ;;  %vm1788_vm7 = vweird.f32 %v2625_v27  ;;  %v942_v35 = vmul.f32 %v3250_v3, %v3258_v43 }
 0x296   : > { %2626 = vrsqrt.f32 %v3437_v25  ;;  %v1363_v16 = vmul.f32 %v3336_v23, %v3336_v23  ;;  %v1699_v9 = vadd.f32 %v1667_v32, %v1457_v14  ;;  %vm1789_vm9 = vmor %vm1787_vm8, %vm1788_vm7  ;;  %vm1797_vm11 = vweird.f32 %v3437_v25 }
 0x297   : > { %v1783_v46 = vmul.f32 %v2625_v27, %v1782_v60  ;;  %v3451_v38 = vpop.f32.mrf.mxu1  ;;  %v1780_v29 = vsel %vm1779_vm6, %v2623_v49, %v1776_v54  ;;  %v1153_v54 = vadd.f32 %v1121_v52, %v879_v44 }
 0x298   : > { %v1604_v12 = vmul.f32 %v3451_v38, %v3451_v38  ;;  %v2082_v34 = vmul.f32 %v1780_v29, %v1698_v55 }
 0x299   : > { %v1784_v61 = vmul.f32 0.5, %v1783_v46  ;;  %v3481_v43 = vpop.f32.mrf.mxu2  ;;  %v1395_v29 = vadd.f32 %v1363_v16, %v1153_v54 }
 0x29a   : > { %v1636_v49 = vadd.f32 %v1604_v12, %v1394_v36  ;;  %2482 = vmatmul.msk.bf16.gmra.mxu3 %vm402_vm0, %v3127_v4  ;;  %2494 = vmatmul.msk.bf16.gmra.mxu1 %vm402_vm0, %v3117_v2  ;;  %v2115_v28 = vadd.f32 %v3422_v56, %v2082_v34  ;;  %v1184_v4 = vmul.f32 %v3252_v39, %v3266_v51 }
 0x29b   : > { %v1785_v15 = vsub.f32 1.5, %v1784_v61  ;;  %v1426_v51 = vmul.f32 %v3387_v41, %v3324_v19  ;;  %v880_v12 = vmul.f32 %v3298_v11, %v3298_v11  ;;  %v3491_v61 = vpop.f32.mrf.mxu3  ;;  %v1668_v19 = vmul.f32 %v3394_v17, %v3420_v62 }
 0x29c   : > { %v2627_v6 = vpop.eup %2626  ;;  %v3473_v60 = vmax.f32 %v1636_v49, 1e-24  ;;  %2147 = vst [vmem:[%s3444_s28 + $0x8] sm:$0xff] %v2115_v28  ;;  %v1216_v36 = vadd.f32 %v1184_v4, %v942_v35  ;;  %v1364_v28 = vmul.f32 %v3348_v45, %v3348_v45 }
 0x29d   : > { %v1786_v47 = vmul.f32 %v2625_v27, %v1785_v15  ;;  %v1792_v2 = vmul.f32 %v2627_v6, %v3437_v25  ;;  %vm1798_vm10 = vweird.f32 %v2627_v6  ;;  %v1123_v25 = vmul.f32 %v3354_v57, %v3354_v57 }
 0x29e   : > { %2628 = vrsqrt.f32 %v3473_v60  ;;  %v1458_v15 = vadd.f32 %v1426_v51, %v1216_v36  ;;  %vm1799_vm12 = vmor %vm1797_vm11, %vm1798_vm10  ;;  %vm1807_vm14 = vweird.f32 %v3473_v60 }
 0x29f   : > { %v1790_v7 = vsel %vm1789_vm9, %v2625_v27, %v1786_v47  ;;  %v1793_v46 = vmul.f32 %v2627_v6, %v1792_v2  ;;  %v3483_v55 = vpop.f32.mrf.mxu1  ;;  %v1122_v27 = vmul.f32 %v3304_v10, %v3304_v10  ;;  %v1427_v2 = vmul.f32 %v3387_v41, %v3334_v42 }
 0x2a0   : > { %v2083_v21 = vmul.f32 %v1790_v7, %v1699_v9  ;;  %v1605_v40 = vmul.f32 %v3483_v55, %v3483_v55  ;;  %v1700_v16 = vadd.f32 %v1668_v19, %v1458_v15  ;;  %v1669_v42 = vmul.f32 %v3394_v17, %v3451_v38 }
 0x2a1   : > { %v1794_v44 = vmul.f32 0.5, %v1793_v46  ;;  %v1154_v14 = vadd.f32 %v1122_v27, %v880_v12  ;;  %v881_v46 = vmul.f32 %v3312_v20, %v3312_v20  ;;  %v3516_v51 = vpop.f32.mrf.mxu2  ;;  %v1459_v27 = vadd.f32 %v1427_v2, %v3284_v63 }
 0x2a2   : > { %v2116_v34 = vadd.f32 %v3422_v56, %v2083_v21  ;;  %v1637_v52 = vadd.f32 %v1605_v40, %v1395_v29  ;;  %v1365_v38 = vmul.f32 %v3358_v31, %v3358_v31 }
 0x2a3   : > { %v1795_v32 = vsub.f32 1.5, %v1794_v44  ;;  %v1396_v54 = vadd.f32 %v1364_v28, %v1154_v14  ;;  %v3525_v36 = vpop.f32.mrf.mxu3  ;;  %v944_v44 = vmul.f32 %v3250_v3, %v3286_v0  ;;  %v1428_v28 = vmul.f32 %v3387_v41, %v3336_v23 }
 0x2a4   : > { %v2629_v49 = vpop.eup %2628  ;;  %2148 = vst [vmem:[%s3444_s28 + $0x10] sm:$0xff] %v2116_v34  ;;  %v3501_v11 = vmax.f32 %v1637_v52, 1e-24  ;;  %v1155_v52 = vadd.f32 %v1123_v25, %v881_v46  ;;  %v882_v14 = vmul.f32 %v3322_v18, %v3322_v18  ;;  %v1366_v25 = vmul.f32 %v3380_v33, %v3380_v33 }
 0x2a5   : > { %v1796_v35 = vmul.f32 %v2627_v6, %v1795_v32  ;;  %v1802_v10 = vmul.f32 %v2629_v49, %v3473_v60  ;;  %vm1808_vm13 = vweird.f32 %v2629_v49  ;;  %v1701_v32 = vadd.f32 %v1669_v42, %v1459_v27 }
 0x2a6   : > { %2630 = vrsqrt.f32 %v3501_v11  ;;  %vm1809_vm15 = vmor %vm1807_vm14, %vm1808_vm13  ;;  %vm1817_vm2 = vweird.f32 %v3501_v11 }
 0x2a7   : > { %v1800_v62 = vsel %vm1799_vm12, %v2627_v6, %v1796_v35  ;;  %v1803_v4 = vmul.f32 %v2629_v49, %v1802_v10  ;;  %v3506_v47 = vpop.f32.mrf.mxu1  ;;  %v1397_v35 = vadd.f32 %v1365_v38, %v1155_v52  ;;  %v1429_v38 = vmul.f32 %v3387_v41, %v3348_v45 }
 0x2a8   : > { %v2084_v9 = vmul.f32 %v1800_v62, %v1700_v16  ;;  %v1606_v7 = vmul.f32 %v3506_v47, %v3506_v47 }
 0x2a9   : > { %v1804_v6 = vmul.f32 0.5, %v1803_v4  ;;  %v1670_v4 = vmul.f32 %v3394_v17, %v3483_v55  ;;  %v3553_v2 = vpop.f32.mrf.mxu2 }
 0x2aa   : > { %v2117_v29 = vadd.f32 %v3422_v56, %v2084_v9  ;;  %v1638_v21 = vadd.f32 %v1606_v7, %v1396_v54  ;;  %2483 = vmatmul.msk.bf16.gmra.mxu3 %vm402_vm0, %v3143_v8  ;;  %2495 = vmatmul.msk.bf16.gmra.mxu1 %vm402_vm0, %v3067_v30  ;;  %v1186_v8 = vmul.f32 %v3252_v39, %v3290_v5 }
 0x2ab   : > { %v1805_v40 = vsub.f32 1.5, %v1804_v6 }
 0x2ac   : > { %v2631_v12 = vpop.eup %2630  ;;  %2149 = vst [vmem:[%s3444_s28 + $0x18] sm:$0xff] %v2117_v29  ;;  %v3533_v34 = vmax.f32 %v1638_v21, 1e-24  ;;  %v1218_v10 = vadd.f32 %v1186_v8, %v944_v44  ;;  %v3561_v29 = vpop.f32.mrf.mxu3 }
 0x2ad   : > { %v1806_v30 = vmul.f32 %v2629_v49, %v1805_v40  ;;  %v1812_v19 = vmul.f32 %v2631_v12, %v3501_v11  ;;  %vm1818_vm1 = vweird.f32 %v2631_v12 }
 0x2ae   : > { %2632 = vrsqrt.f32 %v3533_v34  ;;  %v1460_v7 = vadd.f32 %v1428_v28, %v1218_v10  ;;  %vm1819_vm3 = vmor %vm1817_vm2, %vm1818_vm1  ;;  %vm1827_vm5 = vweird.f32 %v3533_v34 }
 0x2af   : > { %v1810_v63 = vsel %vm1809_vm15, %v2629_v49, %v1806_v30  ;;  %v1813_v0 = vmul.f32 %v2631_v12, %v1812_v19  ;;  %v3540_v15 = vpop.f32.mrf.mxu1  ;;  %v1124_v49 = vmul.f32 %v3372_v53, %v3372_v53  ;;  %v883_v19 = vmul.f32 %v3332_v22, %v3332_v22 }
 0x2b0   : > { %v2085_v5 = vmul.f32 %v1810_v63, %v1701_v32  ;;  %v1607_v60 = vmul.f32 %v3540_v15, %v3540_v15  ;;  %v1702_v21 = vadd.f32 %v1670_v4, %v1460_v7  ;;  %v1125_v32 = vmul.f32 %v3406_v26, %v3406_v26 }
 0x2b1   : > { %v1814_v16 = vmul.f32 0.5, %v1813_v0  ;;  %v1156_v42 = vadd.f32 %v1124_v49, %v882_v14  ;;  %v1671_v63 = vmul.f32 %v3394_v17, %v3506_v47  ;;  %v1188_v47 = vmul.f32 %v3252_v39, %v3354_v57  ;;  %v3590_v14 = vpop.f32.mrf.mxu2 }
 0x2b2   : > { %v2118_v62 = vadd.f32 %v3422_v56, %v2085_v5  ;;  %v1639_v23 = vadd.f32 %v1607_v60, %v1397_v35  ;;  %v946_v35 = vmul.f32 %v3250_v3, %v3312_v20  ;;  %v1461_v5 = vadd.f32 %v1429_v38, %v3308_v13 }
 0x2b3   : > { %v1815_v54 = vsub.f32 1.5, %v1814_v16  ;;  %v1398_v8 = vadd.f32 %v1366_v25, %v1156_v42  ;;  %v1367_v60 = vmul.f32 %v3415_v1, %v3415_v1  ;;  %v1157_v49 = vadd.f32 %v1125_v32, %v883_v19 }
 0x2b4   : > { %v2633_v9 = vpop.eup %2632  ;;  %2150 = vst [vmem:[%s3444_s28 + $0x20] sm:$0xff] %v2118_v62  ;;  %v3558_v46 = vmax.f32 %v1639_v23, 1e-24  ;;  %v1703_v20 = vadd.f32 %v1671_v63, %v1461_v5  ;;  %v3595_v62 = vpop.f32.mrf.mxu3  ;;  %v1430_v57 = vmul.f32 %v3387_v41, %v3358_v31  ;;  %v1220_v25 = vadd.f32 %v1188_v47, %v946_v35 }
 0x2b5   : > { %v1816_v6 = vmul.f32 %v2631_v12, %v1815_v54  ;;  %v1822_v55 = vmul.f32 %v2633_v9, %v3533_v34  ;;  %vm1828_vm4 = vweird.f32 %v2633_v9  ;;  %v1399_v54 = vadd.f32 %v1367_v60, %v1157_v49 }
 0x2b6   : > { %2634 = vrsqrt.f32 %v3558_v46  ;;  %vm1829_vm6 = vmor %vm1827_vm5, %vm1828_vm4  ;;  %v947_v38 = vmul.f32 %v3250_v3, %v3322_v18  ;;  %v1189_v19 = vmul.f32 %v3252_v39, %v3372_v53  ;;  %vm1837_vm8 = vweird.f32 %v3558_v46 }
 0x2b7   : > { %v1820_v40 = vsel %vm1819_vm3, %v2631_v12, %v1816_v6  ;;  %v1823_v44 = vmul.f32 %v2633_v9, %v1822_v55  ;;  %v3565_v27 = vpop.f32.mrf.mxu1  ;;  %v884_v6 = vmul.f32 %v3338_v24, %v3338_v24  ;;  %v1431_v35 = vmul.f32 %v3387_v41, %v3380_v33 }
 0x2b8   : > { %v2086_v30 = vmul.f32 %v1820_v40, %v1702_v21  ;;  %v1608_v11 = vmul.f32 %v3565_v27, %v3565_v27  ;;  %v1672_v21 = vmul.f32 %v3394_v17, %v3540_v15  ;;  %v1221_v60 = vadd.f32 %v1189_v19, %v947_v38 }
 0x2b9   : > { %v1824_v52 = vmul.f32 0.5, %v1823_v44  ;;  %v3622_v18 = vpop.f32.mrf.mxu2  ;;  %v885_v47 = vmul.f32 %v3350_v59, %v3350_v59  ;;  %v1673_v33 = vmul.f32 %v3394_v17, %v3565_v27  ;;  %v1190_v27 = vmul.f32 %v3252_v39, %v3406_v26 }
 0x2ba   : > { %v2119_v12 = vadd.f32 %v3422_v56, %v2086_v30  ;;  %v1640_v0 = vadd.f32 %v1608_v11, %v1398_v8  ;;  %2496 = vmatmul.msk.bf16.gmra.mxu1 %vm402_vm0, %v3084_v37  ;;  %v1462_v8 = vadd.f32 %v1430_v57, %v1220_v25  ;;  %v1368_v30 = vmul.f32 %v3449_v58, %v3449_v58 }
 0x2bb   : > { %v1825_v45 = vsub.f32 1.5, %v1824_v52  ;;  %v948_v57 = vmul.f32 %v3250_v3, %v3332_v22 }
 0x2bc   : > { %v2635_v28 = vpop.eup %2634  ;;  %2151 = vst [vmem:[%s3444_s28 + $0x28] sm:$0xff] %v2119_v12  ;;  %v3586_v10 = vmax.f32 %v1640_v0, 1e-24  ;;  %v1704_v12 = vadd.f32 %v1672_v21, %v1462_v8  ;;  %v1432_v21 = vmul.f32 %v3387_v41, %v3415_v1  ;;  %v4342_v1 = vld [vmem:[#allocation13_spill] sm:$0xff] }
 0x2bd   : > { %v1826_v37 = vmul.f32 %v2633_v9, %v1825_v45  ;;  %v1832_v16 = vmul.f32 %v2635_v28, %v3558_v46  ;;  %vm1838_vm7 = vweird.f32 %v2635_v28 }
 0x2be   : > { %2636 = vrsqrt.f32 %v3586_v10  ;;  %vm1839_vm9 = vmor %vm1837_vm8, %vm1838_vm7  ;;  %vm1847_vm11 = vweird.f32 %v3586_v10 }
 0x2bf   : > { %v1830_v13 = vsel %vm1829_vm6, %v2633_v9, %v1826_v37  ;;  %v1833_v4 = vmul.f32 %v2635_v28, %v1832_v16  ;;  %v3597_v23 = vpop.f32.mrf.mxu1  ;;  %v1126_v9 = vmul.f32 %v3439_v50, %v3439_v50  ;;  %v3632_v37 = vpop.f32.mrf.mxu3 }
 0x2c0   : > { %v2087_v7 = vmul.f32 %v1830_v13, %v1703_v20  ;;  %v1609_v34 = vmul.f32 %v3597_v23, %v3597_v23  ;;  %v1674_v19 = vmul.f32 %v3394_v17, %v3597_v23  ;;  %v1191_v23 = vmul.f32 %v3252_v39, %v3439_v50 }
 0x2c1   : > { %v1834_v55 = vmul.f32 0.5, %v1833_v4  ;;  %v1158_v32 = vadd.f32 %v1126_v9, %v884_v6  ;;  %v3659_v38 = vpop.f32.mrf.mxu2 }
 0x2c2   : > { %v2120_v42 = vadd.f32 %v3422_v56, %v2087_v7  ;;  %v1641_v31 = vadd.f32 %v1609_v34, %v1399_v54  ;;  %v1463_v54 = vadd.f32 %v1431_v35, %v1221_v60  ;;  %v1369_v7 = vmul.f32 %v3491_v61, %v3491_v61 }
 0x2c3   : > { %v1835_v40 = vsub.f32 1.5, %v1834_v55  ;;  %v1400_v53 = vadd.f32 %v1368_v30, %v1158_v32  ;;  %v1128_v30 = vmul.f32 %v3516_v51, %v3516_v51 }
 0x2c4   : > { %v2637_v44 = vpop.eup %2636  ;;  %2152 = vst [vmem:[%s3444_s28 + $0x30] sm:$0xff] %v2120_v42  ;;  %v3615_v11 = vmax.f32 %v1641_v31, 1e-24  ;;  %v1705_v55 = vadd.f32 %v1673_v33, %v1463_v54  ;;  %v1433_v33 = vmul.f32 %v3387_v41, %v3449_v58  ;;  %v1129_v54 = vmul.f32 %v3553_v2, %v3553_v2  ;;  %v2684_v58 = vld [vmem:[%s4286_s2 + $0x70] sm:$0xff] }
 0x2c5   : > { %v1836_v52 = vmul.f32 %v2635_v28, %v1835_v40  ;;  %v1842_v15 = vmul.f32 %v2637_v44, %v3586_v10  ;;  %vm1848_vm10 = vweird.f32 %v2637_v44  ;;  %v1222_v10 = vadd.f32 %v1190_v27, %v948_v57 }
 0x2c6   : > { %2638 = vrsqrt.f32 %v3615_v11  ;;  %vm1849_vm12 = vmor %vm1847_vm11, %vm1848_vm10  ;;  %vm1857_vm14 = vweird.f32 %v3615_v11 }
 0x2c7   : > { %v1840_v63 = vsel %vm1839_vm9, %v2635_v28, %v1836_v52  ;;  %v1843_v0 = vmul.f32 %v2637_v44, %v1842_v15  ;;  %v3624_v45 = vpop.f32.mrf.mxu1  ;;  %v1127_v28 = vmul.f32 %v3481_v43, %v3481_v43  ;;  %v886_v15 = vmul.f32 %v4342_v1, %v4342_v1  ;;  %v3668_v32 = vpop.f32.mrf.mxu3 }
 0x2c8   : > { %v2088_v5 = vmul.f32 %v1840_v63, %v1704_v12  ;;  %v1610_v46 = vmul.f32 %v3624_v45, %v3624_v45  ;;  %v1464_v35 = vadd.f32 %v1432_v21, %v1222_v10 }
 0x2c9   : > { %v1844_v16 = vmul.f32 0.5, %v1843_v0  ;;  %v1159_v6 = vadd.f32 %v1127_v28, %v885_v47  ;;  %v949_v0 = vmul.f32 %v3250_v3, %v3338_v24  ;;  %v1160_v47 = vadd.f32 %v1128_v30, %v886_v15 }
 0x2ca   : > { %v2121_v49 = vadd.f32 %v3422_v56, %v2088_v5  ;;  %v1642_v20 = vadd.f32 %v1610_v46, %v1400_v53  ;;  %2497 = vmatmul.msk.bf16.gmra.mxu1 %vm402_vm0, %v3099_v48  ;;  %v1370_v53 = vmul.f32 %v3525_v36, %v3525_v36  ;;  %v1434_v15 = vmul.f32 %v3387_v41, %v3491_v61 }
 0x2cb   : > { %v1845_v13 = vsub.f32 1.5, %v1844_v16  ;;  %v1401_v31 = vadd.f32 %v1369_v7, %v1159_v6  ;;  %v1706_v16 = vadd.f32 %v1674_v19, %v1464_v35  ;;  %v3699_v6 = vpop.f32.mrf.mxu2 }
 0x2cc   : > { %v2639_v4 = vpop.eup %2638  ;;  %2153 = vst [vmem:[%s3444_s28 + $0x38] sm:$0xff] %v2121_v49  ;;  %v3646_v34 = vmax.f32 %v1642_v20, 1e-24  ;;  %v1402_v20 = vadd.f32 %v1370_v53, %v1160_v47  ;;  %v1130_v53 = vmul.f32 %v3590_v14, %v3590_v14  ;;  %v4344_v47 = vld [vmem:[#allocation15_spill] sm:$0xff] }
 0x2cd   : > { %v1846_v25 = vmul.f32 %v2637_v44, %v1845_v13  ;;  %v1852_v48 = vmul.f32 %v2639_v4, %v3615_v11  ;;  %vm1858_vm13 = vweird.f32 %v2639_v4  ;;  %v1223_v11 = vadd.f32 %v1191_v23, %v949_v0 }
 0x2ce   : > { %2640 = vrsqrt.f32 %v3646_v34  ;;  %vm1859_vm15 = vmor %vm1857_vm14, %vm1858_vm13  ;;  %vm1867_vm2 = vweird.f32 %v3646_v34 }
 0x2cf   : > { %v1850_v22 = vsel %vm1849_vm12, %v2637_v44, %v1846_v25  ;;  %v1853_v9 = vmul.f32 %v2639_v4, %v1852_v48  ;;  %v3653_v42 = vpop.f32.mrf.mxu1  ;;  %v4343_v25 = vld [vmem:[#allocation14_spill] sm:$0xff]  ;;  %v1465_v21 = vadd.f32 %v1433_v33, %v1223_v11 }
 0x2d0   : > { %v2089_v40 = vmul.f32 %v1850_v22, %v1705_v55  ;;  %v1611_v26 = vmul.f32 %v3653_v42, %v3653_v42  ;;  %v887_v48 = vmul.f32 %v4343_v25, %v4343_v25 }
 0x2d1   : > { %v1854_v8 = vmul.f32 0.5, %v1853_v9  ;;  %v950_v9 = vmul.f32 %v3250_v3, %v3350_v59 }
 0x2d2   : > { %v2122_v44 = vadd.f32 %v3422_v56, %v2089_v40  ;;  %v1643_v52 = vadd.f32 %v1611_v26, %v1401_v31  ;;  %v1192_v40 = vmul.f32 %v3252_v39, %v3481_v43  ;;  %v3710_v26 = vpop.f32.mrf.mxu3  ;;  %v1161_v30 = vadd.f32 %v1129_v54, %v887_v48 }
 0x2d3   : > { %v1855_v12 = vsub.f32 1.5, %v1854_v8  ;;  %v951_v54 = vmul.f32 %v3250_v3, %v4342_v1  ;;  %v1131_v1 = vmul.f32 %v3622_v18, %v3622_v18 }
 0x2d4   : > { %v2641_v63 = vpop.eup %2640  ;;  %2154 = vst [vmem:[%s3444_s28 + $0x40] sm:$0xff] %v2122_v44  ;;  %v3675_v5 = vmax.f32 %v1643_v52, 1e-24  ;;  %v1224_v0 = vadd.f32 %v1192_v40, %v950_v9 }
 0x2d5   : > { %v1856_v46 = vmul.f32 %v2639_v4, %v1855_v12  ;;  %v1862_v60 = vmul.f32 %v2641_v63, %v3646_v34  ;;  %vm1868_vm1 = vweird.f32 %v2641_v63 }
 0x2d6   : > { %2642 = vrsqrt.f32 %v3675_v5  ;;  %vm1869_vm3 = vmor %vm1867_vm2, %vm1868_vm1  ;;  %vm1877_vm5 = vweird.f32 %v3675_v5 }
 0x2d7   : > { %v1860_v24 = vsel %vm1859_vm15, %v2639_v4, %v1856_v46  ;;  %v1863_v28 = vmul.f32 %v2641_v63, %v1862_v60  ;;  %v3682_v49 = vpop.f32.mrf.mxu1  ;;  %v1675_v4 = vmul.f32 %v3394_v17, %v3624_v45  ;;  %v1371_v45 = vmul.f32 %v3561_v29, %v3561_v29 }
 0x2d8   : > { %v2090_v13 = vmul.f32 %v1860_v24, %v1706_v16  ;;  %v1612_v50 = vmul.f32 %v3682_v49, %v3682_v49  ;;  %v888_v16 = vmul.f32 %v4344_v47, %v4344_v47  ;;  %v1466_v24 = vadd.f32 %v1434_v15, %v1224_v0 }
 0x2d9   : > { %v1864_v57 = vmul.f32 0.5, %v1863_v28  ;;  %v1707_v44 = vadd.f32 %v1675_v4, %v1465_v21  ;;  %v1403_v43 = vadd.f32 %v1371_v45, %v1161_v30  ;;  %v1372_v28 = vmul.f32 %v3595_v62, %v3595_v62  ;;  %v4345_v30 = vld [vmem:[#allocation16_spill] sm:$0xff] }
 0x2da   : > { %v2123_v7 = vadd.f32 %v3422_v56, %v2090_v13  ;;  %v1644_v27 = vadd.f32 %v1612_v50, %v1402_v20  ;;  %2498 = vmatmul.msk.bf16.gmra.mxu1 %vm402_vm0, %v2684_v58  ;;  %v1193_v20 = vmul.f32 %v3252_v39, %v3516_v51  ;;  %v3735_v13 = vpop.f32.mrf.mxu2  ;;  %v1162_v11 = vadd.f32 %v1130_v53, %v888_v16 }
 0x2db   : > { %v1865_v55 = vsub.f32 1.5, %v1864_v57  ;;  %v1435_v58 = vmul.f32 %v3387_v41, %v3525_v36  ;;  %v2685_v36 = vld [vmem:[%s4286_s2 + $0x78] sm:$0xff] }
 0x2dc   : > { %v2643_v22 = vpop.eup %2642  ;;  %2155 = vst [vmem:[%s3444_s28 + $0x48] sm:$0xff] %v2123_v7  ;;  %v3706_v31 = vmax.f32 %v1644_v27, 1e-24  ;;  %v3742_v7 = vpop.f32.mrf.mxu3  ;;  %v1225_v9 = vadd.f32 %v1193_v20, %v951_v54 }
 0x2dd   : > { %v1866_v10 = vmul.f32 %v2641_v63, %v1865_v55  ;;  %v1872_v8 = vmul.f32 %v2643_v22, %v3675_v5  ;;  %vm1878_vm4 = vweird.f32 %v2643_v22  ;;  %v1404_v5 = vadd.f32 %v1372_v28, %v1162_v11 }
 0x2de   : > { %2644 = vrsqrt.f32 %v3706_v31  ;;  %vm1879_vm6 = vmor %vm1877_vm5, %vm1878_vm4  ;;  %vm1887_vm8 = vweird.f32 %v3706_v31 }
 0x2df   : > { %v1870_v59 = vsel %vm1869_vm3, %v2641_v63, %v1866_v10  ;;  %v1873_v19 = vmul.f32 %v2643_v22, %v1872_v8  ;;  %v3715_v52 = vpop.f32.mrf.mxu1  ;;  %v1676_v63 = vmul.f32 %v3394_v17, %v3653_v42 }
 0x2e0   : > { %v2091_v12 = vmul.f32 %v1870_v59, %v1707_v44  ;;  %v1613_v34 = vmul.f32 %v3715_v52, %v3715_v52  ;;  %v889_v44 = vmul.f32 %v4345_v30, %v4345_v30  ;;  %v1467_v59 = vadd.f32 %v1435_v58, %v1225_v9 }
 0x2e1   : > { %v1874_v35 = vmul.f32 0.5, %v1873_v19  ;;  %v1708_v57 = vadd.f32 %v1676_v63, %v1466_v24  ;;  %v1373_v19 = vmul.f32 %v3632_v37, %v3632_v37 }
 0x2e2   : > { %v2124_v23 = vadd.f32 %v3422_v56, %v2091_v12  ;;  %v1645_v46 = vadd.f32 %v1613_v34, %v1403_v43  ;;  %v1163_v34 = vadd.f32 %v1131_v1, %v889_v44  ;;  %v3773_v53 = vpop.f32.mrf.mxu2 }
 0x2e3   : > { %v1875_v60 = vsub.f32 1.5, %v1874_v35  ;;  %v952_v35 = vmul.f32 %v3250_v3, %v4343_v25  ;;  %v1132_v25 = vmul.f32 %v3659_v38, %v3659_v38 }
 0x2e4   : > { %v2645_v61 = vpop.eup %2644  ;;  %2156 = vst [vmem:[%s3444_s28 + $0x50] sm:$0xff] %v2124_v23  ;;  %v3731_v33 = vmax.f32 %v1645_v46, 1e-24  ;;  %v3781_v28 = vpop.f32.mrf.mxu3 }
 0x2e5   : > { %v1876_v42 = vmul.f32 %v2643_v22, %v1875_v60  ;;  %v1882_v50 = vmul.f32 %v2645_v61, %v3706_v31  ;;  %vm1888_vm7 = vweird.f32 %v2645_v61  ;;  %v1405_v31 = vadd.f32 %v1373_v19, %v1163_v34  ;;  %v4347_v34 = vld [vmem:[#allocation20_spill] sm:$0xff] }
 0x2e6   : > { %2646 = vrsqrt.f32 %v3731_v33  ;;  %vm1897_vm10 = vweird.f32 %v3731_v33 }
 0x2e7   : > { %v1880_v4 = vsel %vm1879_vm6, %v2643_v22, %v1876_v42  ;;  %v1883_v27 = vmul.f32 %v2645_v61, %v1882_v50  ;;  %v3744_v51 = vpop.f32.mrf.mxu1  ;;  %v1677_v22 = vmul.f32 %v3394_v17, %v3682_v49  ;;  %v1194_v49 = vmul.f32 %v3252_v39, %v3553_v2 }
 0x2e8   : > { %v2092_v48 = vmul.f32 %v1880_v4, %v1708_v57  ;;  %v1614_v55 = vmul.f32 %v3744_v51, %v3744_v51  ;;  %v1436_v2 = vmul.f32 %v3387_v41, %v3561_v29  ;;  %v1678_v42 = vmul.f32 %v3394_v17, %v3715_v52  ;;  %v4346_v57 = vld [vmem:[#allocation18_spill] sm:$0xff] }
 0x2e9   : > { %v1884_v21 = vmul.f32 0.5, %v1883_v27  ;;  %v1709_v0 = vadd.f32 %v1677_v22, %v1467_v59  ;;  %v1226_v24 = vadd.f32 %v1194_v49, %v952_v35  ;;  %v890_v54 = vmul.f32 %v4346_v57, %v4346_v57 }
 0x2ea   : > { %v2125_v45 = vadd.f32 %v3422_v56, %v2092_v48  ;;  %v1646_v40 = vadd.f32 %v1614_v55, %v1404_v5  ;;  %2499 = vmatmul.msk.bf16.gmra.mxu1 %vm402_vm0, %v2685_v36  ;;  %vm1889_vm0 = vmor %vm1887_vm8, %vm1888_vm7  ;;  %v1374_v27 = vmul.f32 %v3668_v32, %v3668_v32  ;;  %v1195_v5 = vmul.f32 %v3252_v39, %v3590_v14  ;;  %v3808_v44 = vpop.f32.mrf.mxu2 }
 0x2eb   : > { %v1885_v10 = vsub.f32 1.5, %v1884_v21  ;;  %v1468_v4 = vadd.f32 %v1436_v2, %v1226_v24  ;;  %v1164_v55 = vadd.f32 %v1132_v25, %v890_v54  ;;  %v953_v21 = vmul.f32 %v3250_v3, %v4344_v47 }
 0x2ec   : > { %v2647_v8 = vpop.eup %2646  ;;  %2157 = vst [vmem:[%s3444_s28 + $0x58] sm:$0xff] %v2125_v45  ;;  %v3764_v15 = vmax.f32 %v1646_v40, 1e-24  ;;  %v1437_v14 = vmul.f32 %v3387_v41, %v3595_v62  ;;  %v1133_v47 = vmul.f32 %v3699_v6, %v3699_v6  ;;  %v1679_v19 = vmul.f32 %v3394_v17, %v3744_v51  ;;  %v3815_v62 = vpop.f32.mrf.mxu3 }
 0x2ed   : > { %v1886_v43 = vmul.f32 %v2645_v61, %v1885_v10  ;;  %v1892_v12 = vmul.f32 %v2647_v8, %v3731_v33  ;;  %vm1898_vm9 = vweird.f32 %v2647_v8  ;;  %v1710_v9 = vadd.f32 %v1678_v42, %v1468_v4 }
 0x2ee   : > { %2648 = vrsqrt.f32 %v3764_v15  ;;  %vm1899_vm11 = vmor %vm1897_vm10, %vm1898_vm9  ;;  %v1406_v40 = vadd.f32 %v1374_v27, %v1164_v55  ;;  %v1227_v10 = vadd.f32 %v1195_v5, %v953_v21  ;;  %v1196_v2 = vmul.f32 %v3252_v39, %v3622_v18 }
 0x2ef   : > { %v1890_v23 = vsel %vm1889_vm0, %v2645_v61, %v1886_v43  ;;  %v1893_v63 = vmul.f32 %v2647_v8, %v1892_v12  ;;  %v3775_v46 = vpop.f32.mrf.mxu1  ;;  %vm1907_vm13 = vweird.f32 %v3764_v15  ;;  %v954_v24 = vmul.f32 %v3250_v3, %v4345_v30 }
 0x2f0   : > { %v2093_v60 = vmul.f32 %v1890_v23, %v1709_v0  ;;  %v1615_v16 = vmul.f32 %v3775_v46, %v3775_v46  ;;  %v891_v0 = vmul.f32 %v4347_v34, %v4347_v34  ;;  %v1469_v35 = vadd.f32 %v1437_v14, %v1227_v10 }
 0x2f1   : > { %v1894_v20 = vmul.f32 0.5, %v1893_v63  ;;  %v1375_v23 = vmul.f32 %v3710_v26, %v3710_v26  ;;  %v1438_v18 = vmul.f32 %v3387_v41, %v3632_v37  ;;  %v1134_v4 = vmul.f32 %v3735_v13, %v3735_v13 }
 0x2f2   : > { %v2126_v61 = vadd.f32 %v3422_v56, %v2093_v60  ;;  %v1647_v50 = vadd.f32 %v1615_v16, %v1405_v31  ;;  %v1165_v60 = vadd.f32 %v1133_v47, %v891_v0  ;;  %v1711_v16 = vadd.f32 %v1679_v19, %v1469_v35  ;;  %v3842_v5 = vpop.f32.mrf.mxu2 }
 0x2f3   : > { %v1895_v29 = vsub.f32 1.5, %v1894_v20  ;;  %v1376_v21 = vmul.f32 %v3742_v7, %v3742_v7  ;;  %v955_v10 = vmul.f32 %v3250_v3, %v4346_v57  ;;  %v1135_v35 = vmul.f32 %v3773_v53, %v3773_v53 }
 0x2f4   : > { %v2649_v11 = vpop.eup %2648  ;;  %2158 = vst [vmem:[%s3444_s28 + $0x60] sm:$0xff] %v2126_v61  ;;  %v3793_v58 = vmax.f32 %v1647_v50, 1e-24  ;;  %v1407_v42 = vadd.f32 %v1375_v23, %v1165_v60 }
 0x2f5   : > { %v1896_v48 = vmul.f32 %v2647_v8, %v1895_v29  ;;  %v1902_v52 = vmul.f32 %v2649_v11, %v3764_v15  ;;  %vm1908_vm12 = vweird.f32 %v2649_v11  ;;  %v1228_v29 = vadd.f32 %v1196_v2, %v954_v24 }
 0x2f6   : > { %2650 = vrsqrt.f32 %v3793_v58  ;;  %vm1909_vm14 = vmor %vm1907_vm13, %vm1908_vm12  ;;  %vm1917_vm1 = vweird.f32 %v3793_v58 }
 0x2f7   : > { %v1900_v1 = vsel %vm1899_vm11, %v2647_v8, %v1896_v48  ;;  %v1903_v45 = vmul.f32 %v2649_v11, %v1902_v52  ;;  %v3802_v22 = vpop.f32.mrf.mxu1  ;;  %v4348_v52 = vld [vmem:[#allocation22_spill] sm:$0xff] }
 0x2f8   : > { %v2094_v36 = vmul.f32 %v1900_v1, %v1710_v9  ;;  %v1616_v33 = vmul.f32 %v3802_v22, %v3802_v22  ;;  %v892_v55 = vmul.f32 %v4348_v52, %v4348_v52  ;;  %v1470_v9 = vadd.f32 %v1438_v18, %v1228_v29 }
 0x2f9   : > { %v1904_v59 = vmul.f32 0.5, %v1903_v45  ;;  %v1197_v45 = vmul.f32 %v3252_v39, %v3659_v38  ;;  %v1439_v38 = vmul.f32 %v3387_v41, %v3668_v32 }
 0x2fa   : > { %v2127_v8 = vadd.f32 %v3422_v56, %v2094_v36  ;;  %v1648_v49 = vadd.f32 %v1616_v33, %v1406_v40  ;;  %v1166_v36 = vadd.f32 %v1134_v4, %v892_v55 }
 0x2fb   : > { %v1905_v43 = vsub.f32 1.5, %v1904_v59 }
 0x2fc   : > { %v2651_v12 = vpop.eup %2650  ;;  %2159 = vst [vmem:[%s3444_s28 + $0x68] sm:$0xff] %v2127_v8  ;;  %v3822_v63 = vmax.f32 %v1648_v49, 1e-24  ;;  %v1408_v19 = vadd.f32 %v1376_v21, %v1166_v36 }
 0x2fd   : > { %v1906_v51 = vmul.f32 %v2649_v11, %v1905_v43  ;;  %v1912_v31 = vmul.f32 %v2651_v12, %v3793_v58  ;;  %vm1918_vm15 = vweird.f32 %v2651_v12  ;;  %v1229_v43 = vadd.f32 %v1197_v45, %v955_v10 }
 0x2fe   : > { %2652 = vrsqrt.f32 %v3822_v63  ;;  %vm1919_vm2 = vmor %vm1917_vm1, %vm1918_vm15  ;;  %vm1927_vm4 = vweird.f32 %v3822_v63 }
 0x2ff   : > { %v1910_v20 = vsel %vm1909_vm14, %v2649_v11, %v1906_v51  ;;  %v1913_v25 = vmul.f32 %v2651_v12, %v1912_v31  ;;  %v3831_v61 = vpop.f32.mrf.mxu1  ;;  %v1680_v11 = vmul.f32 %v3394_v17, %v3775_v46  ;;  %v3853_v46 = vpop.f32.mrf.mxu3  ;;  %v4349_v51 = vld [vmem:[#allocation23_spill] sm:$0xff]  ;;  %v1471_v60 = vadd.f32 %v1439_v38, %v1229_v43 }
 0x300   : > { %v2095_v15 = vmul.f32 %v1910_v20, %v1711_v16  ;;  %v1617_v50 = vmul.f32 %v3831_v61, %v3831_v61  ;;  %v893_v31 = vmul.f32 %v4349_v51, %v4349_v51  ;;  %v1377_v16 = vmul.f32 %v3781_v28, %v3781_v28 }
 0x301   : > { %v1914_v54 = vmul.f32 0.5, %v1913_v25  ;;  %v1712_v33 = vadd.f32 %v1680_v11, %v1470_v9  ;;  %v1198_v20 = vmul.f32 %v3252_v39, %v3699_v6  ;;  %v3880_v25 = vpop.f32.mrf.mxu2 }
 0x302   : > { %v2128_v30 = vadd.f32 %v3422_v56, %v2095_v15  ;;  %v1649_v27 = vadd.f32 %v1617_v50, %v1407_v42  ;;  %v1167_v42 = vadd.f32 %v1135_v35, %v893_v31  ;;  %v956_v50 = vmul.f32 %v3250_v3, %v4347_v34 }
 0x303   : > { %v1915_v37 = vsub.f32 1.5, %v1914_v54  ;;  %v1136_v34 = vmul.f32 %v3808_v44, %v3808_v44 }
 0x304   : > { %v2653_v48 = vpop.eup %2652  ;;  %2160 = vst [vmem:[%s3444_s28 + $0x70] sm:$0xff] %v2128_v30  ;;  %v3849_v1 = vmax.f32 %v1649_v27, 1e-24  ;;  %v1440_v30 = vmul.f32 %v3387_v41, %v3710_v26 }
 0x305   : > { %v1916_v14 = vmul.f32 %v2651_v12, %v1915_v37  ;;  %v1922_v40 = vmul.f32 %v2653_v48, %v3822_v63  ;;  %vm1928_vm3 = vweird.f32 %v2653_v48  ;;  %v1409_v63 = vadd.f32 %v1377_v16, %v1167_v42 }
 0x306   : > { %2654 = vrsqrt.f32 %v3849_v1  ;;  %vm1929_vm5 = vmor %vm1927_vm4, %vm1928_vm3  ;;  %v1230_v37 = vadd.f32 %v1198_v20, %v956_v50  ;;  %vm1937_vm7 = vweird.f32 %v3849_v1 }
 0x307   : > { %v1920_v59 = vsel %vm1919_vm2, %v2651_v12, %v1916_v14  ;;  %v1923_v47 = vmul.f32 %v2653_v48, %v1922_v40  ;;  %v3860_v8 = vpop.f32.mrf.mxu1  ;;  %v1681_v12 = vmul.f32 %v3394_v17, %v3802_v22  ;;  %v3887_v29 = vpop.f32.mrf.mxu3  ;;  %v4350_v14 = vld [vmem:[#allocation25_spill] sm:$0xff] }
 0x308   : > { %v2096_v58 = vmul.f32 %v1920_v59, %v1712_v33  ;;  %v1618_v49 = vmul.f32 %v3860_v8, %v3860_v8  ;;  %v894_v40 = vmul.f32 %v4350_v14, %v4350_v14  ;;  %v1472_v36 = vadd.f32 %v1440_v30, %v1230_v37 }
 0x309   : > { %v1924_v0 = vmul.f32 0.5, %v1923_v47  ;;  %v1713_v15 = vadd.f32 %v1681_v12, %v1471_v60  ;;  %v1378_v33 = vmul.f32 %v3815_v62, %v3815_v62  ;;  %v1199_v59 = vmul.f32 %v3252_v39, %v3735_v13 }
 0x30a   : > { %v2129_v57 = vadd.f32 %v3422_v56, %v2096_v58  ;;  %v1650_v23 = vadd.f32 %v1618_v49, %v1408_v19  ;;  %v1168_v38 = vadd.f32 %v1136_v34, %v894_v40  ;;  %v957_v58 = vmul.f32 %v3250_v3, %v4348_v52  ;;  %v3914_v49 = vpop.f32.mrf.mxu2 }
 0x30b   : > { %v1925_v2 = vsub.f32 1.5, %v1924_v0  ;;  %v1441_v13 = vmul.f32 %v3387_v41, %v3742_v7  ;;  %v1137_v52 = vmul.f32 %v3842_v5, %v3842_v5  ;;  %v1683_v60 = vmul.f32 %v3394_v17, %v3860_v8 }
 0x30c   : > { %v2655_v32 = vpop.eup %2654  ;;  %2161 = vst [vmem:[%s3444_s28 + $0x78] sm:$0xff] %v2129_v57  ;;  %v3876_v24 = vmax.f32 %v1650_v23, 1e-24  ;;  %v1231_v23 = vadd.f32 %v1199_v59, %v957_v58 }
 0x30d   : > { %v1926_v22 = vmul.f32 %v2653_v48, %v1925_v2  ;;  %v1932_v18 = vmul.f32 %v2655_v32, %v3849_v1  ;;  %vm1938_vm6 = vweird.f32 %v2655_v32  ;;  %v1410_v1 = vadd.f32 %v1378_v33, %v1168_v38 }
 0x30e   : > { %2656 = vrsqrt.f32 %v3876_v24  ;;  %vm1939_vm8 = vmor %vm1937_vm7, %vm1938_vm6  ;;  %v1473_v42 = vadd.f32 %v1441_v13, %v1231_v23  ;;  %vm1947_vm9 = vweird.f32 %v3876_v24 }
 0x30f   : > { %v1930_v54 = vsel %vm1929_vm5, %v2653_v48, %v1926_v22  ;;  %v1933_v4 = vmul.f32 %v2655_v32, %v1932_v18  ;;  %v3889_v6 = vpop.f32.mrf.mxu1  ;;  %v1682_v48 = vmul.f32 %v3394_v17, %v3831_v61  ;;  %v3922_v2 = vpop.f32.mrf.mxu3  ;;  %v4351_v22 = vld [vmem:[#allocation27_spill] sm:$0xff] }
 0x310   : > { %v2097_v11 = vmul.f32 %v1930_v54, %v1713_v15  ;;  %v1619_v27 = vmul.f32 %v3889_v6, %v3889_v6  ;;  %v895_v18 = vmul.f32 %v4351_v22, %v4351_v22  ;;  %v1379_v15 = vmul.f32 %v3853_v46, %v3853_v46 }
 0x311   : > { %v1934_v55 = vmul.f32 0.5, %v1933_v4  ;;  %v1714_v19 = vadd.f32 %v1682_v48, %v1472_v36  ;;  %v1200_v54 = vmul.f32 %v3252_v39, %v3773_v53  ;;  %v1442_v53 = vmul.f32 %v3387_v41, %v3781_v28 }
 0x312   : > { %v2130_v9 = vadd.f32 %v3422_v56, %v2097_v11  ;;  %v1651_v21 = vadd.f32 %v1619_v27, %v1409_v63  ;;  %v1169_v30 = vadd.f32 %v1137_v52, %v895_v18  ;;  %v1715_v63 = vadd.f32 %v1683_v60, %v1473_v42 }
 0x313   : > { %v1935_v45 = vsub.f32 1.5, %v1934_v55  ;;  %v958_v11 = vmul.f32 %v3250_v3, %v4349_v51  ;;  %v1138_v51 = vmul.f32 %v3880_v25, %v3880_v25  ;;  %v1684_v40 = vmul.f32 %v3394_v17, %v3889_v6 }
 0x314   : > { %v2657_v26 = vpop.eup %2656  ;;  %2162 = vst [vmem:[%s3444_s28 + $0x80] sm:$0xff] %v2130_v9  ;;  %v3905_v10 = vmax.f32 %v1651_v21, 1e-24  ;;  %v1411_v34 = vadd.f32 %v1379_v15, %v1169_v30  ;;  %v3949_v21 = vpop.f32.mrf.mxu2  ;;  %v1381_v30 = vmul.f32 %v3922_v2, %v3922_v2 }
 0x315   : > { %v1936_v47 = vmul.f32 %v2655_v32, %v1935_v45  ;;  %v1942_v61 = vmul.f32 %v2657_v26, %v3876_v24  ;;  %vm1948_vm0 = vweird.f32 %v2657_v26  ;;  %v1232_v48 = vadd.f32 %v1200_v54, %v958_v11  ;;  %v4353_v54 = vld [vmem:[#allocation19_spill] sm:$0xff] }
 0x316   : > { %2658 = vrsqrt.f32 %v3905_v10  ;;  %vm1949_vm10 = vmor %vm1947_vm9, %vm1948_vm0  ;;  %vm1957_vm12 = vweird.f32 %v3905_v10  ;;  %v1202_v11 = vmul.f32 %v3252_v39, %v3842_v5  ;;  %v1444_v5 = vmul.f32 %v3387_v41, %v3853_v46 }
 0x317   : > { %v1940_v43 = vsel %vm1939_vm8, %v2655_v32, %v1936_v47  ;;  %v1943_v0 = vmul.f32 %v2657_v26, %v1942_v61  ;;  %v3916_v35 = vpop.f32.mrf.mxu1  ;;  %v3956_v28 = vpop.f32.mrf.mxu3  ;;  %v4352_v47 = vld [vmem:[#allocation17_spill] sm:$0xff]  ;;  %v1474_v38 = vadd.f32 %v1442_v53, %v1232_v48 }
 0x318   : > { %v2098_v57 = vmul.f32 %v1940_v43, %v1714_v19  ;;  %v1620_v12 = vmul.f32 %v3916_v35, %v3916_v35  ;;  %v896_v61 = vmul.f32 %v4352_v47, %v4352_v47  ;;  %v1380_v19 = vmul.f32 %v3887_v29, %v3887_v29 }
 0x319   : > { %v1944_v31 = vmul.f32 0.5, %v1943_v0  ;;  %v1201_v43 = vmul.f32 %v3252_v39, %v3808_v44  ;;  %v1443_v44 = vmul.f32 %v3387_v41, %v3815_v62 }
 0x31a   : > { %v2131_v32 = vadd.f32 %v3422_v56, %v2098_v57  ;;  %v1652_v16 = vadd.f32 %v1620_v12, %v1410_v1  ;;  %v1170_v13 = vadd.f32 %v1138_v51, %v896_v61  ;;  %v1716_v1 = vadd.f32 %v1684_v40, %v1474_v38 }
 0x31b   : > { %v1945_v7 = vsub.f32 1.5, %v1944_v31  ;;  %v959_v57 = vmul.f32 %v3250_v3, %v4350_v14 }
 0x31c   : > { %v2659_v20 = vpop.eup %2658  ;;  %2163 = vst [vmem:[%s3444_s28 + $0x88] sm:$0xff] %v2131_v32  ;;  %v3934_v50 = vmax.f32 %v1652_v16, 1e-24  ;;  %v1412_v52 = vadd.f32 %v1380_v19, %v1170_v13  ;;  %v3983_v42 = vpop.f32.mrf.mxu2  ;;  %v4354_v19 = vld [vmem:[#allocation21_spill] sm:$0xff] }
 0x31d   : > { %v1946_v4 = vmul.f32 %v2657_v26, %v1945_v7  ;;  %v1952_v8 = vmul.f32 %v2659_v20, %v3905_v10  ;;  %vm1958_vm11 = vweird.f32 %v2659_v20  ;;  %v1233_v60 = vadd.f32 %v1201_v43, %v959_v57 }
 0x31e   : > { %2660 = vrsqrt.f32 %v3934_v50  ;;  %vm1959_vm13 = vmor %vm1957_vm12, %vm1958_vm11  ;;  %v1139_v7 = vmul.f32 %v3914_v49, %v3914_v49  ;;  %vm1967_vm15 = vweird.f32 %v3934_v50  ;;  %v898_v43 = vmul.f32 %v4354_v19, %v4354_v19 }
 0x31f   : > { %v1950_v27 = vsel %vm1949_vm10, %v2657_v26, %v1946_v4  ;;  %v1953_v37 = vmul.f32 %v2659_v20, %v1952_v8  ;;  %v3943_v55 = vpop.f32.mrf.mxu1  ;;  %v897_v4 = vmul.f32 %v4353_v54, %v4353_v54  ;;  %v1475_v8 = vadd.f32 %v1443_v44, %v1233_v60 }
 0x320   : > { %v2099_v9 = vmul.f32 %v1950_v27, %v1715_v63  ;;  %v1621_v24 = vmul.f32 %v3943_v55, %v3943_v55 }
 0x321   : > { %v1954_v45 = vmul.f32 0.5, %v1953_v37  ;;  %v1171_v53 = vadd.f32 %v1139_v7, %v897_v4 }
 0x322   : > { %v2132_v26 = vadd.f32 %v3422_v56, %v2099_v9  ;;  %v1653_v36 = vadd.f32 %v1621_v24, %v1411_v34  ;;  %v960_v9 = vmul.f32 %v3250_v3, %v4351_v22 }
 0x323   : > { %v1955_v33 = vsub.f32 1.5, %v1954_v45  ;;  %v1413_v51 = vadd.f32 %v1381_v30, %v1171_v53  ;;  %v4355_v30 = vld [vmem:[#allocation24_spill] sm:$0xff] }
 0x324   : > { %v2661_v59 = vpop.eup %2660  ;;  %2164 = vst [vmem:[%s3444_s28 + $0x90] sm:$0xff] %v2132_v26  ;;  %v3963_v58 = vmax.f32 %v1653_v36, 1e-24  ;;  %v1234_v40 = vadd.f32 %v1202_v11, %v960_v9  ;;  %v4021_v57 = vpop.f32.mrf.mxu2  ;;  %v899_v11 = vmul.f32 %v4355_v30, %v4355_v30 }
 0x325   : > { %v1956_v6 = vmul.f32 %v2659_v20, %v1955_v33  ;;  %v1962_v0 = vmul.f32 %v2661_v59, %v3934_v50  ;;  %vm1968_vm14 = vweird.f32 %v2661_v59  ;;  %v1140_v33 = vmul.f32 %v3949_v21, %v3949_v21 }
 0x326   : > { %2662 = vrsqrt.f32 %v3963_v58  ;;  %vm1969_vm1 = vmor %vm1967_vm15, %vm1968_vm14  ;;  %vm1977_vm3 = vweird.f32 %v3963_v58 }
 0x327   : > { %v1960_v12 = vsel %vm1959_vm13, %v2659_v20, %v1956_v6  ;;  %v1963_v23 = vmul.f32 %v2661_v59, %v1962_v0  ;;  %v3972_v31 = vpop.f32.mrf.mxu1  ;;  %v1685_v20 = vmul.f32 %v3394_v17, %v3916_v35  ;;  %v3994_v35 = vpop.f32.mrf.mxu3  ;;  %v1476_v6 = vadd.f32 %v1444_v5, %v1234_v40 }
 0x328   : > { %v2100_v10 = vmul.f32 %v1960_v12, %v1716_v1  ;;  %v1622_v32 = vmul.f32 %v3972_v31, %v3972_v31  ;;  %v1382_v0 = vmul.f32 %v3956_v28, %v3956_v28  ;;  %v1203_v1 = vmul.f32 %v3252_v39, %v3880_v25 }
 0x329   : > { %v1964_v16 = vmul.f32 0.5, %v1963_v23  ;;  %v1717_v34 = vadd.f32 %v1685_v20, %v1475_v8  ;;  %v1172_v23 = vadd.f32 %v1140_v33, %v898_v43  ;;  %v962_v5 = vmul.f32 %v3250_v3, %v4353_v54 }
 0x32a   : > { %v2133_v14 = vadd.f32 %v3422_v56, %v2100_v10  ;;  %v1654_v18 = vadd.f32 %v1622_v32, %v1412_v52  ;;  %v961_v52 = vmul.f32 %v3250_v3, %v4352_v47  ;;  %v1141_v47 = vmul.f32 %v3983_v42, %v3983_v42 }
 0x32b   : > { %v1965_v62 = vsub.f32 1.5, %v1964_v16  ;;  %v1445_v16 = vmul.f32 %v3387_v41, %v3887_v29  ;;  %v1142_v54 = vmul.f32 %v4021_v57, %v4021_v57 }
 0x32c   : > { %v2663_v15 = vpop.eup %2662  ;;  %2165 = vst [vmem:[%s3444_s28 + $0x98] sm:$0xff] %v2133_v14  ;;  %v3990_v63 = vmax.f32 %v1654_v18, 1e-24  ;;  %v1235_v20 = vadd.f32 %v1203_v1, %v961_v52 }
 0x32d   : > { %v1966_v27 = vmul.f32 %v2661_v59, %v1965_v62  ;;  %v1972_v37 = vmul.f32 %v2663_v15, %v3963_v58  ;;  %vm1978_vm2 = vweird.f32 %v2663_v15  ;;  %v1414_v58 = vadd.f32 %v1382_v0, %v1172_v23  ;;  %v4356_v0 = vld [vmem:[#allocation26_spill] sm:$0xff] }
 0x32e   : > { %2664 = vrsqrt.f32 %v3990_v63  ;;  %vm1979_vm4 = vmor %vm1977_vm3, %vm1978_vm2  ;;  %vm1987_vm6 = vweird.f32 %v3990_v63  ;;  %v900_v1 = vmul.f32 %v4356_v0, %v4356_v0 }
 0x32f   : > { %v1970_v24 = vsel %vm1969_vm1, %v2661_v59, %v1966_v27  ;;  %v1973_v48 = vmul.f32 %v2663_v15, %v1972_v37  ;;  %v4001_v45 = vpop.f32.mrf.mxu1  ;;  %v1686_v59 = vmul.f32 %v3394_v17, %v3943_v55  ;;  %v4028_v10 = vpop.f32.mrf.mxu3  ;;  %v1477_v27 = vadd.f32 %v1445_v16, %v1235_v20 }
 0x330   : > { %v2101_v50 = vmul.f32 %v1970_v24, %v1717_v34  ;;  %v1623_v26 = vmul.f32 %v4001_v45, %v4001_v45  ;;  %v1383_v37 = vmul.f32 %v3994_v35, %v3994_v35  ;;  %v1204_v34 = vmul.f32 %v3252_v39, %v3914_v49 }
 0x331   : > { %v1974_v36 = vmul.f32 0.5, %v1973_v48  ;;  %v1718_v44 = vadd.f32 %v1686_v59, %v1476_v6  ;;  %v1173_v24 = vadd.f32 %v1141_v47, %v899_v11  ;;  %v1446_v49 = vmul.f32 %v3387_v41, %v3922_v2 }
 0x332   : > { %v2134_v22 = vadd.f32 %v3422_v56, %v2101_v50  ;;  %v1655_v61 = vadd.f32 %v1623_v26, %v1413_v51  ;;  %v4055_v51 = vpop.f32.mrf.mxu2  ;;  %v963_v16 = vmul.f32 %v3250_v3, %v4354_v19 }
 0x333   : > { %v1975_v38 = vsub.f32 1.5, %v1974_v36  ;;  %v1143_v19 = vmul.f32 %v4055_v51, %v4055_v51 }
 0x334   : > { %v2665_v46 = vpop.eup %2664  ;;  %2166 = vst [vmem:[%s3444_s28 + $0xa0] sm:$0xff] %v2134_v22  ;;  %v4017_v13 = vmax.f32 %v1655_v61, 1e-24  ;;  %v1236_v22 = vadd.f32 %v1204_v34, %v962_v5 }
 0x335   : > { %v1976_v55 = vmul.f32 %v2663_v15, %v1975_v38  ;;  %v1982_v12 = vmul.f32 %v2665_v46, %v3990_v63  ;;  %vm1988_vm5 = vweird.f32 %v2665_v46  ;;  %v1415_v63 = vadd.f32 %v1383_v37, %v1173_v24  ;;  %v4357_v37 = vld [vmem:[#allocation28_spill] sm:$0xff] }
 0x336   : > { %2666 = vrsqrt.f32 %v4017_v13  ;;  %vm1989_vm7 = vmor %vm1987_vm6, %vm1988_vm5  ;;  %vm1997_vm0 = vweird.f32 %v4017_v13  ;;  %v901_v34 = vmul.f32 %v4357_v37, %v4357_v37 }
 0x337   : > { %v1980_v32 = vsel %vm1979_vm4, %v2663_v15, %v1976_v55  ;;  %v1983_v60 = vmul.f32 %v2665_v46, %v1982_v12  ;;  %v4030_v25 = vpop.f32.mrf.mxu1  ;;  %v1687_v15 = vmul.f32 %v3394_v17, %v3972_v31  ;;  %v4063_v59 = vpop.f32.mrf.mxu3  ;;  %v1478_v55 = vadd.f32 %v1446_v49, %v1236_v22 }
 0x338   : > { %v2102_v7 = vmul.f32 %v1980_v32, %v1718_v44  ;;  %v1624_v14 = vmul.f32 %v4030_v25, %v4030_v25  ;;  %v1384_v12 = vmul.f32 %v4028_v10, %v4028_v10  ;;  %v1205_v44 = vmul.f32 %v3252_v39, %v3949_v21 }
 0x339   : > { %v1984_v18 = vmul.f32 0.5, %v1983_v60  ;;  %v1719_v48 = vadd.f32 %v1687_v15, %v1477_v27  ;;  %v1174_v32 = vadd.f32 %v1142_v54, %v900_v1  ;;  %v1447_v21 = vmul.f32 %v3387_v41, %v3956_v28 }
 0x33a   : > { %v2135_v62 = vadd.f32 %v3422_v56, %v2102_v7  ;;  %v1656_v4 = vadd.f32 %v1624_v14, %v1414_v58  ;;  %v1237_v47 = vadd.f32 %v1205_v44, %v963_v16  ;;  %v964_v49 = vmul.f32 %v3250_v3, %v4355_v30 }
 0x33b   : > { %v1985_v8 = vsub.f32 1.5, %v1984_v18  ;;  %v1416_v20 = vadd.f32 %v1384_v12, %v1174_v32  ;;  %v1207_v32 = vmul.f32 %v3252_v39, %v4021_v57  ;;  %v1449_v57 = vmul.f32 %v3387_v41, %v4028_v10 }
 0x33c   : > { %v2667_v29 = vpop.eup %2666  ;;  %2167 = vst [vmem:[%s3444_s28 + $0xa8] sm:$0xff] %v2135_v62  ;;  %v4046_v53 = vmax.f32 %v1656_v4, 1e-24  ;;  %v4090_v62 = vpop.f32.mrf.mxu2 }
 0x33d   : > { %v1986_v9 = vmul.f32 %v2665_v46, %v1985_v8  ;;  %v1992_v31 = vmul.f32 %v2667_v29, %v4017_v13  ;;  %vm1998_vm8 = vweird.f32 %v2667_v29  ;;  %v1689_v8 = vmul.f32 %v3394_v17, %v4030_v25 }
 0x33e   : > { %2668 = vrsqrt.f32 %v4046_v53  ;;  %vm1999_vm9 = vmor %vm1997_vm0, %vm1998_vm8  ;;  %vm2007_vm11 = vweird.f32 %v4046_v53 }
 0x33f   : > { %v1990_v50 = vsel %vm1989_vm7, %v2665_v46, %v1986_v9  ;;  %v1993_v26 = vmul.f32 %v2667_v29, %v1992_v31  ;;  %v4057_v40 = vpop.f32.mrf.mxu1  ;;  %v1688_v46 = vmul.f32 %v3394_v17, %v4001_v45  ;;  %v4097_v28 = vpop.f32.mrf.mxu3  ;;  %v1479_v9 = vadd.f32 %v1447_v21, %v1237_v47 }
 0x340   : > { %v2103_v36 = vmul.f32 %v1990_v50, %v1719_v48  ;;  %v1625_v33 = vmul.f32 %v4057_v40, %v4057_v40  ;;  %v1385_v31 = vmul.f32 %v4063_v59, %v4063_v59  ;;  %v1206_v48 = vmul.f32 %v3252_v39, %v3983_v42 }
 0x341   : > { %v1994_v61 = vmul.f32 0.5, %v1993_v26  ;;  %v1720_v60 = vadd.f32 %v1688_v46, %v1478_v55  ;;  %v1175_v50 = vadd.f32 %v1143_v19, %v901_v34  ;;  %v1721_v26 = vadd.f32 %v1689_v8, %v1479_v9  ;;  %v4358_v55 = vld [vmem:[#allocation29_spill] sm:$0xff]  ;;  %v4359_v34 = vld [vmem:[#allocation30_spill] sm:$0xff] }
 0x342   : > { %v2136_v38 = vadd.f32 %v3422_v56, %v2103_v36  ;;  %v1657_v43 = vadd.f32 %v1625_v33, %v1415_v63  ;;  %v1448_v42 = vmul.f32 %v3387_v41, %v3994_v35  ;;  %v1238_v54 = vadd.f32 %v1206_v48, %v964_v49 }
 0x343   : > { %v1995_v2 = vsub.f32 1.5, %v1994_v61  ;;  %v1417_v22 = vadd.f32 %v1385_v31, %v1175_v50  ;;  %v1144_v46 = vmul.f32 %v4090_v62, %v4090_v62  ;;  %v902_v12 = vmul.f32 %v4358_v55, %v4358_v55 }
 0x344   : > { %v2669_v6 = vpop.eup %2668  ;;  %2168 = vst [vmem:[%s3444_s28 + $0xb0] sm:$0xff] %v2136_v38  ;;  %v4075_v23 = vmax.f32 %v1657_v43, 1e-24  ;;  %v1690_v43 = vmul.f32 %v3394_v17, %v4057_v40  ;;  %v1480_v44 = vadd.f32 %v1448_v42, %v1238_v54  ;;  %v965_v21 = vmul.f32 %v3250_v3, %v4356_v0 }
 0x345   : > { %v1996_v52 = vmul.f32 %v2667_v29, %v1995_v2  ;;  %v2002_v45 = vmul.f32 %v2669_v6, %v4046_v53  ;;  %vm2008_vm10 = vweird.f32 %v2669_v6  ;;  %v903_v9 = vmul.f32 %v4359_v34, %v4359_v34 }
 0x346   : > { %2670 = vrsqrt.f32 %v4075_v23  ;;  %vm2009_vm12 = vmor %vm2007_vm11, %vm2008_vm10  ;;  %vm2017_vm14 = vweird.f32 %v4075_v23  ;;  %v1239_v19 = vadd.f32 %v1207_v32, %v965_v21 }
 0x347   : > { %v2000_v58 = vsel %vm1999_vm9, %v2667_v29, %v1996_v52  ;;  %v2003_v7 = vmul.f32 %v2669_v6, %v2002_v45  ;;  %v4084_v14 = vpop.f32.mrf.mxu1  ;;  %v1386_v52 = vmul.f32 %v4097_v28, %v4097_v28  ;;  %v4135_v40 = vpop.f32.mrf.mxu3 }
 0x348   : > { %v2104_v18 = vmul.f32 %v2000_v58, %v1720_v60  ;;  %v1626_v13 = vmul.f32 %v4084_v14, %v4084_v14  ;;  %v1176_v58 = vadd.f32 %v1144_v46, %v902_v12  ;;  %v1481_v31 = vadd.f32 %v1449_v57, %v1239_v19  ;;  %v4360_v12 = vld [vmem:[#allocation31_spill] sm:$0xff] }
 0x349   : > { %v2004_v15 = vmul.f32 0.5, %v2003_v7  ;;  %v1722_v7 = vadd.f32 %v1690_v43, %v1480_v44  ;;  %v1387_v48 = vmul.f32 %v4135_v40, %v4135_v40  ;;  %v904_v44 = vmul.f32 %v4360_v12, %v4360_v12 }
 0x34a   : > { %v2137_v4 = vadd.f32 %v3422_v56, %v2104_v18  ;;  %v1658_v29 = vadd.f32 %v1626_v13, %v1416_v20  ;;  %v1418_v47 = vadd.f32 %v1386_v52, %v1176_v58 }
 0x34b   : > { %v2005_v11 = vsub.f32 1.5, %v2004_v15 }
 0x34c   : > { %v2671_v27 = vpop.eup %2670  ;;  %2169 = vst [vmem:[%s3444_s28 + $0xb8] sm:$0xff] %v2137_v4  ;;  %v4104_v24 = vmax.f32 %v1658_v29, 1e-24  ;;  %v1691_v29 = vmul.f32 %v3394_v17, %v4084_v14 }
 0x34d   : > { %v2006_v25 = vmul.f32 %v2669_v6, %v2005_v11  ;;  %v2012_v5 = vmul.f32 %v2671_v27, %v4075_v23  ;;  %vm2018_vm13 = vweird.f32 %v2671_v27 }
 0x34e   : > { %2672 = vrsqrt.f32 %v4104_v24  ;;  %vm2019_vm15 = vmor %vm2017_vm14, %vm2018_vm13  ;;  %vm2027_vm2 = vweird.f32 %v4104_v24 }
 0x34f   : > { %v2010_v63 = vsel %vm2009_vm12, %v2669_v6, %v2006_v25  ;;  %v2013_v36 = vmul.f32 %v2671_v27, %v2012_v5  ;;  %v4113_v33 = vpop.f32.mrf.mxu1  ;;  %v4124_v6 = vpop.f32.mrf.mxu2  ;;  %v1208_v5 = vmul.f32 %v3252_v39, %v4055_v51 }
 0x350   : > { %v2105_v53 = vmul.f32 %v2010_v63, %v1721_v26  ;;  %v1627_v61 = vmul.f32 %v4113_v33, %v4113_v33  ;;  %v1145_v8 = vmul.f32 %v4124_v6, %v4124_v6  ;;  %v1723_v63 = vadd.f32 %v1691_v29, %v1481_v31  ;;  %v4169_v42 = vpop.f32.mrf.mxu3 }
 0x351   : > { %v2014_v38 = vmul.f32 0.5, %v2013_v36  ;;  %v966_v36 = vmul.f32 %v3250_v3, %v4357_v37  ;;  %v1388_v32 = vmul.f32 %v4169_v42, %v4169_v42 }
 0x352   : > { %v2138_v30 = vadd.f32 %v3422_v56, %v2105_v53  ;;  %v1659_v2 = vadd.f32 %v1627_v61, %v1417_v22  ;;  %v1177_v49 = vadd.f32 %v1145_v8, %v903_v9  ;;  %v1450_v61 = vmul.f32 %v3387_v41, %v4063_v59  ;;  %v4361_v9 = vld [vmem:[#allocation32_spill] sm:$0xff] }
 0x353   : > { %v2015_v35 = vsub.f32 1.5, %v2014_v38  ;;  %v1240_v46 = vadd.f32 %v1208_v5, %v966_v36  ;;  %v905_v31 = vmul.f32 %v4361_v9, %v4361_v9 }
 0x354   : > { %v2673_v1 = vpop.eup %2672  ;;  %2170 = vst [vmem:[%s3444_s28 + $0xc0] sm:$0xff] %v2138_v30  ;;  %v4131_v45 = vmax.f32 %v1659_v2, 1e-24  ;;  %v1692_v2 = vmul.f32 %v3394_v17, %v4113_v33 }
 0x355   : > { %v2016_v60 = vmul.f32 %v2671_v27, %v2015_v35  ;;  %v2022_v16 = vmul.f32 %v2673_v1, %v4104_v24  ;;  %vm2028_vm1 = vweird.f32 %v2673_v1  ;;  %v1419_v24 = vadd.f32 %v1387_v48, %v1177_v49 }
 0x356   : > { %2674 = vrsqrt.f32 %v4131_v45  ;;  %vm2029_vm3 = vmor %vm2027_vm2, %vm2028_vm1  ;;  %v1482_v52 = vadd.f32 %v1450_v61, %v1240_v46  ;;  %vm2037_vm5 = vweird.f32 %v4131_v45 }
 0x357   : > { %v2020_v20 = vsel %vm2019_vm15, %v2671_v27, %v2016_v60  ;;  %v2023_v18 = vmul.f32 %v2673_v1, %v2022_v16  ;;  %v4142_v13 = vpop.f32.mrf.mxu1  ;;  %v4162_v50 = vpop.f32.mrf.mxu2  ;;  %v1209_v16 = vmul.f32 %v3252_v39, %v4090_v62  ;;  %v1451_v62 = vmul.f32 %v3387_v41, %v4097_v28 }
 0x358   : > { %v2106_v23 = vmul.f32 %v2020_v20, %v1722_v7  ;;  %v1628_v15 = vmul.f32 %v4142_v13, %v4142_v13  ;;  %v1146_v37 = vmul.f32 %v4162_v50, %v4162_v50  ;;  %v1724_v21 = vadd.f32 %v1692_v2, %v1482_v52  ;;  %v4200_v8 = vpop.f32.mrf.mxu3 }
 0x359   : > { %v2024_v4 = vmul.f32 0.5, %v2023_v18  ;;  %v967_v20 = vmul.f32 %v3250_v3, %v4358_v55  ;;  %v1389_v5 = vmul.f32 %v4200_v8, %v4200_v8  ;;  %v1211_v52 = vmul.f32 %v3252_v39, %v4162_v50 }
 0x35a   : > { %v2139_v0 = vadd.f32 %v3422_v56, %v2106_v23  ;;  %v1660_v11 = vadd.f32 %v1628_v15, %v1418_v47  ;;  %v1178_v7 = vadd.f32 %v1146_v37, %v904_v44 }
 0x35b   : > { %v2025_v27 = vsub.f32 1.5, %v2024_v4  ;;  %v1241_v4 = vadd.f32 %v1209_v16, %v967_v20 }
 0x35c   : > { %v2675_v10 = vpop.eup %2674  ;;  %2171 = vst [vmem:[%s3444_s28 + $0xc8] sm:$0xff] %v2139_v0  ;;  %v4158_v25 = vmax.f32 %v1660_v11, 1e-24  ;;  %v1420_v15 = vadd.f32 %v1388_v32, %v1178_v7  ;;  %v1693_v11 = vmul.f32 %v3394_v17, %v4142_v13  ;;  %v1210_v13 = vmul.f32 %v3252_v39, %v4124_v6 }
 0x35d   : > { %v2026_v14 = vmul.f32 %v2673_v1, %v2025_v27  ;;  %v2032_v26 = vmul.f32 %v2675_v10, %v4131_v45  ;;  %vm2038_vm4 = vweird.f32 %v2675_v10  ;;  %v1483_v48 = vadd.f32 %v1451_v62, %v1241_v4 }
 0x35e   : > { %2676 = vrsqrt.f32 %v4158_v25  ;;  %vm2039_vm6 = vmor %vm2037_vm5, %vm2038_vm4  ;;  %vm2047_vm8 = vweird.f32 %v4158_v25 }
 0x35f   : > { %v2030_v22 = vsel %vm2029_vm3, %v2673_v1, %v2026_v14  ;;  %v2033_v53 = vmul.f32 %v2675_v10, %v2032_v26  ;;  %v4171_v51 = vpop.f32.mrf.mxu1  ;;  %v4196_v18 = vpop.f32.mrf.mxu2  ;;  %v1725_v36 = vadd.f32 %v1693_v11, %v1483_v48 }
 0x360   : > { %v2107_v54 = vmul.f32 %v2030_v22, %v1723_v63  ;;  %v1629_v38 = vmul.f32 %v4171_v51, %v4171_v51  ;;  %v1147_v29 = vmul.f32 %v4196_v18, %v4196_v18  ;;  %v968_v22 = vmul.f32 %v3250_v3, %v4359_v34 }
 0x361   : > { %v2034_v30 = vmul.f32 0.5, %v2033_v53 }
 0x362   : > { %v2140_v43 = vadd.f32 %v3422_v56, %v2107_v54  ;;  %v1661_v35 = vadd.f32 %v1629_v38, %v1419_v24  ;;  %v1179_v63 = vadd.f32 %v1147_v29, %v905_v31  ;;  %v1452_v54 = vmul.f32 %v3387_v41, %v4135_v40 }
 0x363   : > { %v2035_v1 = vsub.f32 1.5, %v2034_v30  ;;  %v1242_v37 = vadd.f32 %v1210_v13, %v968_v22 }
 0x364   : > { %v2677_v59 = vpop.eup %2676  ;;  %2172 = vst [vmem:[%s3444_s28 + $0xd0] sm:$0xff] %v2140_v43  ;;  %v4187_v60 = vmax.f32 %v1661_v35, 1e-24  ;;  %v1694_v43 = vmul.f32 %v3394_v17, %v4171_v51 }
 0x365   : > { %v2036_v58 = vmul.f32 %v2675_v10, %v2035_v1  ;;  %v2042_v33 = vmul.f32 %v2677_v59, %v4158_v25  ;;  %vm2048_vm7 = vweird.f32 %v2677_v59  ;;  %v1421_v25 = vadd.f32 %v1389_v5, %v1179_v63 }
 0x366   : > { %2678 = vrsqrt.f32 %v4187_v60  ;;  %vm2049_vm0 = vmor %vm2047_vm8, %vm2048_vm7  ;;  %v1484_v1 = vadd.f32 %v1452_v54, %v1242_v37  ;;  %vm2057_vm10 = vweird.f32 %v4187_v60 }
 0x367   : > { %v2040_v57 = vsel %vm2039_vm6, %v2675_v10, %v2036_v58  ;;  %v2043_v47 = vmul.f32 %v2677_v59, %v2042_v33  ;;  %v1595_v23 = vpop.f32.mrf.mxu1  ;;  %v969_v58 = vmul.f32 %v3250_v3, %v4360_v12  ;;  %v1453_v33 = vmul.f32 %v3387_v41, %v4169_v42 }
 0x368   : > { %v2108_v45 = vmul.f32 %v2040_v57, %v1724_v21  ;;  %v1630_v19 = vmul.f32 %v1595_v23, %v1595_v23  ;;  %v1726_v32 = vadd.f32 %v1694_v43, %v1484_v1  ;;  %v1695_v57 = vmul.f32 %v3394_v17, %v1595_v23 }
 0x369   : > { %v2044_v0 = vmul.f32 0.5, %v2043_v47  ;;  %v1243_v20 = vadd.f32 %v1211_v52, %v969_v58  ;;  %v1212_v12 = vmul.f32 %v3252_v39, %v4196_v18  ;;  %v970_v23 = vmul.f32 %v3250_v3, %v4361_v9 }
 0x36a   : > { %v2141_v55 = vadd.f32 %v3422_v56, %v2108_v45  ;;  %v1662_v27 = vadd.f32 %v1630_v19, %v1420_v15 }
 0x36b   : > { %v2045_v10 = vsub.f32 1.5, %v2044_v0  ;;  %v1485_v62 = vadd.f32 %v1453_v33, %v1243_v20  ;;  %v1454_v0 = vmul.f32 %v3387_v41, %v4200_v8  ;;  %v1244_v11 = vadd.f32 %v1212_v12, %v970_v23 }
 0x36c   : > { %v2679_v28 = vpop.eup %2678  ;;  %2173 = vst [vmem:[%s3444_s28 + $0xd8] sm:$0xff] %v2141_v55  ;;  %v1759_v14 = vmax.f32 %v1662_v27, 1e-24 }
 0x36d   : > { %v2046_v26 = vmul.f32 %v2677_v59, %v2045_v10  ;;  %v2052_v49 = vmul.f32 %v2679_v28, %v4187_v60  ;;  %vm2058_vm9 = vweird.f32 %v2679_v28  ;;  %v1727_v42 = vadd.f32 %v1695_v57, %v1485_v62 }
 0x36e   : > { %2680 = vrsqrt.f32 %v1759_v14  ;;  %vm2059_vm11 = vmor %vm2057_vm10, %vm2058_vm9  ;;  %vm2067_vm13 = vweird.f32 %v1759_v14  ;;  %v1486_v3 = vadd.f32 %v1454_v0, %v1244_v11 }
 0x36f   : > { %v2050_v53 = vsel %vm2049_vm0, %v2677_v59, %v2046_v26  ;;  %v2053_v61 = vmul.f32 %v2679_v28, %v2052_v49  ;;  %v1597_v24 = vpop.f32.mrf.mxu1 }
 0x370   : > { %v2109_v38 = vmul.f32 %v2050_v53, %v1725_v36  ;;  %v1631_v46 = vmul.f32 %v1597_v24, %v1597_v24  ;;  %v1696_v39 = vmul.f32 %v3394_v17, %v1597_v24 }
 0x371   : > { %v2054_v30 = vmul.f32 0.5, %v2053_v61 }
 0x372   : > { %v2142_v6 = vadd.f32 %v3422_v56, %v2109_v38  ;;  %v1663_v2 = vadd.f32 %v1631_v46, %v1421_v25  ;;  %v1728_v8 = vadd.f32 %v1696_v39, %v1486_v3 }
 0x373   : > { %v2055_v35 = vsub.f32 1.5, %v2054_v30 }
 0x374   : > { %v2681_v34 = vpop.eup %2680  ;;  %2174 = vst [vmem:[%s3444_s28 + $0xe0] sm:$0xff] %v2142_v6  ;;  %v1760_v59 = vmax.f32 %v1663_v2, 1e-24 }
 0x375   : > { %v2056_v44 = vmul.f32 %v2679_v28, %v2055_v35  ;;  %v2062_v40 = vmul.f32 %v2681_v34, %v1759_v14  ;;  %vm2068_vm12 = vweird.f32 %v2681_v34 }
 0x376   : > { %2682 = vrsqrt.f32 %v1760_v59  ;;  %vm2069_vm14 = vmor %vm2067_vm13, %vm2068_vm12  ;;  %vm2077_vm1 = vweird.f32 %v1760_v59 }
 0x377   : > { %v2060_v16 = vsel %vm2059_vm11, %v2679_v28, %v2056_v44  ;;  %v2063_v51 = vmul.f32 %v2681_v34, %v2062_v40 }
 0x378   : > { %v2110_v7 = vmul.f32 %v2060_v16, %v1726_v32 }
 0x379   : > { %v2064_v21 = vmul.f32 0.5, %v2063_v51 }
 0x37a   : > { %v2143_v60 = vadd.f32 %v3422_v56, %v2110_v7 }
 0x37b   : > { %v2065_v50 = vsub.f32 1.5, %v2064_v21 }
 0x37c   : > { %v2683_v47 = vpop.eup %2682  ;;  %2175 = vst [vmem:[%s3444_s28 + $0xe8] sm:$0xff] %v2143_v60 }
 0x37d   : > { %v2066_v15 = vmul.f32 %v2681_v34, %v2065_v50  ;;  %v2072_v45 = vmul.f32 %v2683_v47, %v1760_v59  ;;  %vm2078_vm15 = vweird.f32 %v2683_v47 }
 0x37e   : > { %vm2079_vm2 = vmor %vm2077_vm1, %vm2078_vm15 }
 0x37f   : > { %v2070_v19 = vsel %vm2069_vm14, %v2681_v34, %v2066_v15  ;;  %v2073_v4 = vmul.f32 %v2683_v47, %v2072_v45 }
 0x380   : > { %v2111_v29 = vmul.f32 %v2070_v19, %v1727_v42 }
 0x381   : > { %v2074_v55 = vmul.f32 0.5, %v2073_v4 }
 0x382   : > { %v2144_v27 = vadd.f32 %v3422_v56, %v2111_v29 }
 0x383   : > { %v2075_v18 = vsub.f32 1.5, %v2074_v55 }
 0x384   : > { %2176 = vst [vmem:[%s3444_s28 + $0xf0] sm:$0xff] %v2144_v27 }
 0x385   : > { %v2076_v41 = vmul.f32 %v2683_v47, %v2075_v18 }
 0x387   : > { %v2080_v10 = vsel %vm2079_vm2, %v2683_v47, %v2076_v41 }
 0x388   : > { %v2112_v28 = vmul.f32 %v2080_v10, %v1728_v8 }
 0x38a   : > { %v2145_v17 = vadd.f32 %v3422_v56, %v2112_v28 }
 0x38c   : > { %2177 = vst [vmem:[%s3444_s28 + $0xf8] sm:$0xff] %v2145_v17 }
 0x38d   : > { %2758 = shalt.err (!%p2755_p1)
}
 0x38e   : > { %s2822_s17 = smov 128   ;;  %s2823_s28 = smov 8  }
 0x38f   : > { %2549 = dma.vmem_to_hbm [thread:$0]  (%p2909_p8), %s2195_s23, 4096, %s2197_s15, %s2179_s16, %s2822_s17, %s2822_s17, %s2823_s28  }
 0x390 PF: > { %s4362_s19 = sld [smem:[#allocation12_spill]]  ;;  %s2211_s4 = sand.u32 1, %s2797_s20  }
 0x391   : > { %p2560_p2 = pnand %p2313_p13, %p2913_p9  ;;  %s2212_s26 = scalar_lea.sflag [#allocation5], %s2211_s4 }
 0x393   : > { %p2561_p4 = pneg %p2560_p2 }
 0x395   : > { %2792 = dma.done.wait (%p2561_p4), %s2212_s26, 4096  }
 0x396   : > { %2794 = vsyncadd (%p2561_p4), %s2212_s26, 4294963200  ;;  %s23_s25 = sadd.s32 1, %s4362_s19   ;;  %s4363_s20 = smov %s2801_s21 }
 0x397   : > { %p20_p6 = scmp.ge.s32.totalorder %s23_s25, 4   ;;  %s4364_s21 = smov %s2805_s22 }
 0x398   : > { %s4365_s22 = smov %s2951_s9  ;;  %s4366_s23 = smov %s2813_s24 }
 0x399   : > { %s4367_s24 = smov %s4369_s13  ;;  %22 = sbr.rel (!%p20_p6) target bundleno = 10 (0xa), region = 93 }
 0x39e   :  { %2218 = vsyncpa [#allocation4], 1 }
 0x39f   :  { %2220 = vsyncpa [#allocation4 + $0x1], 1 }
 0x3a0   :  { %2221 = vsyncpa [#allocation5], 1 }
 0x3a1   :  { %2223 = vsyncpa [#allocation5 + $0x1], 1 }
 0x3a2   :  { %2224 = vsyncpa [#allocation6], 1 }
 0x3a3   :  { %2226 = vsyncpa [#allocation6 + $0x1], 1 }

</bundles_post_ra>
